<compile_context>
chip_gen: v5e
topology: v5e:2x2
jax: 0.10.0
libtpu: 0.0.40
codegen_flags: <defaults>
</compile_context>

<pallas_src>
import functools
import math

import jax
import jax.numpy as jnp
from jax.experimental import pallas as pl
from jax.experimental.pallas import tpu as pltpu


def _layer_norm(x, gamma, beta, eps=1e-12):
    # x: (rows, H); gamma/beta: (1, H)
    mean = jnp.mean(x, axis=-1, keepdims=True)
    var = jnp.mean(jnp.square(x - mean), axis=-1, keepdims=True)
    return (x - mean) * jax.lax.rsqrt(var + eps) * gamma + beta


def encoder_layer_kernel(
    x_q_ref, x_kv_ref, bias_ref,
    g1_ref, be1_ref,
    wq_ref, bq_ref, wk_ref, bk_ref, wv_ref, bv_ref, wo_ref, bo_ref,
    g2_ref, be2_ref,
    w1_ref, b1_ref, w2_ref, b2_ref,
    o_ref,
    k_scratch, v_scratch,
    *, num_heads, d_k, compute_dtype,
):
    f32 = jnp.float32
    cdt = compute_dtype
    inv_sqrt_dk = 1.0 / math.sqrt(d_k)

    def mm(a, b):
        # MXU matmul with (optionally bf16) operands and f32 accumulation.
        return jnp.dot(a.astype(cdt), b.astype(cdt), preferred_element_type=f32)

    def mm_nt(a, b):
        # a @ b.T without materializing the transpose (contract last dims).
        return jax.lax.dot_general(
            a.astype(cdt), b.astype(cdt),
            dimension_numbers=(((1,), (1,)), ((), ())),
            preferred_element_type=f32)

    g1 = g1_ref[...].astype(f32)
    be1 = be1_ref[...].astype(f32)

    # ---- K / V projections: computed once per batch element (inner grid axis
    # qi == 0), cached in VMEM scratch, reused by all query tiles of this b. ----
    @pl.when(pl.program_id(1) == 0)
    def _():
        xn_kv = _layer_norm(x_kv_ref[0].astype(f32), g1, be1)        # (T, H)
        for h in range(num_heads):
            k_scratch[h] = (mm(xn_kv, wk_ref[h]) + bk_ref[h]).astype(cdt)
            v_scratch[h] = (mm(xn_kv, wv_ref[h]) + bv_ref[h]).astype(cdt)

    x_q = x_q_ref[0].astype(f32)          # (tq, H)  query rows of this tile
    bias_row = bias_ref[0].astype(f32)    # (1,  T)  additive mask: 0 valid / min padded
    residual = x_q

    # ---- norm1 for the query rows ----
    xn_q = _layer_norm(x_q, g1, be1)

    # Guard for sequences whose keys are ALL padded: the reference zeroes the
    # attention weights there, so the context must be exactly zero.
    any_valid = (jnp.max(bias_row, axis=-1, keepdims=True) > -1.0).astype(f32)   # (1, 1)

    # ---- multi-head self attention: head loop over pre-split weights ----
    acc = jnp.zeros(x_q.shape, f32)
    for h in range(num_heads):
        qh = (mm(xn_q, wq_ref[h]) + bq_ref[h]) * inv_sqrt_dk     # (tq, dk)
        kh = k_scratch[h]                                        # (T,  dk) cached
        vh = v_scratch[h]                                        # (T,  dk) cached

        scores = mm_nt(qh, kh) + bias_row                        # (tq, T)
        m = jnp.max(scores, axis=-1, keepdims=True)
        e = jnp.exp(scores - m)                                  # masked cols underflow to 0
        denom = jnp.sum(e, axis=-1, keepdims=True)
        attn = e * pl.reciprocal(denom, approx=True)             # EUP reciprocal

        ctx_h = mm(attn, vh)                                     # (tq, dk)
        acc = acc + mm(ctx_h, wo_ref[h])                         # accumulated out-projection

    attn_out = acc * any_valid + bo_ref[...].astype(f32)
    x = residual + attn_out                                      # dropout = identity (eval)

    # ---- norm2 + positionwise feed-forward ----
    residual = x
    g2 = g2_ref[...].astype(f32)
    be2 = be2_ref[...].astype(f32)
    xn2 = _layer_norm(x, g2, be2)
    h1 = jnp.maximum(mm(xn2, w1_ref[...]) + b1_ref[...].astype(f32), 0.0)   # ReLU
    ffn = mm(h1, w2_ref[...]) + b2_ref[...].astype(f32)
    o_ref[0] = (residual + ffn).astype(o_ref.dtype)


def transformer_encoder_layer(x, mask, params, *, num_heads,
                              q_block=None, compute_dtype=jnp.float32):
    B, T, H = x.shape
    F = params["w1"].shape[1]
    assert H % num_heads == 0
    d_k = H // num_heads
    tq = T if q_block is None else q_block
    assert T % tq == 0, "q_block must divide T"
    nq = T // tq

    f32 = jnp.float32
    min_val = float(jnp.finfo(jnp.float32).min)
    # Precompute additive attention mask once: 0 where valid, f32-min where padded.
    bias = jnp.where(mask == 0, min_val, 0.0).astype(f32)          # (B, 1, T)

    cdt = compute_dtype

    # Pre-split projection weights per head in the wrapper (free):
    #   in-proj (H, H) -> (num_heads, H, d_k); out-proj (H, H) -> (num_heads, d_k, H)
    def split_in(w):
        return w.reshape(H, num_heads, d_k).transpose(1, 0, 2).astype(cdt)

    wq_h = split_in(params["wq"])
    wk_h = split_in(params["wk"])
    wv_h = split_in(params["wv"])
    bq_h = params["bq"].reshape(num_heads, 1, d_k).astype(f32)
    bk_h = params["bk"].reshape(num_heads, 1, d_k).astype(f32)
    bv_h = params["bv"].reshape(num_heads, 1, d_k).astype(f32)
    wo_h = params["wo"].reshape(num_heads, d_k, H).astype(cdt)
    w1 = params["w1"].astype(cdt)
    w2 = params["w2"].astype(cdt)

    kernel = functools.partial(encoder_layer_kernel, num_heads=num_heads,
                               d_k=d_k, compute_dtype=cdt)

    def full(shape):
        return pl.BlockSpec(shape, lambda b, qi: (0,) * len(shape))

    in_specs = [
        pl.BlockSpec((1, tq, H), lambda b, qi: (b, qi, 0)),      # x (query tile)
        pl.BlockSpec((1, T, H), lambda b, qi: (b, 0, 0)),        # x (full seq for K/V)
        pl.BlockSpec((1, 1, T), lambda b, qi: (b, 0, 0)),        # additive mask bias
        full((1, H)), full((1, H)),                              # norm1 gamma / beta
        full((num_heads, H, d_k)), full((num_heads, 1, d_k)),    # Wq, bq (per head)
        full((num_heads, H, d_k)), full((num_heads, 1, d_k)),    # Wk, bk
        full((num_heads, H, d_k)), full((num_heads, 1, d_k)),    # Wv, bv
        full((num_heads, d_k, H)), full((1, H)),                 # Wo (per head), bo
        full((1, H)), full((1, H)),                              # norm2 gamma / beta
        full((H, F)), full((1, F)),                              # W1, b1
        full((F, H)), full((1, H)),                              # W2, b2
    ]

    return pl.pallas_call(
        kernel,
        out_shape=jax.ShapeDtypeStruct((B, T, H), x.dtype),
        grid_spec=pltpu.PrefetchScalarGridSpec(
            num_scalar_prefetch=0,
            grid=(B, nq),
            in_specs=in_specs,
            out_specs=pl.BlockSpec((1, tq, H), lambda b, qi: (b, qi, 0)),
            scratch_shapes=[
                pltpu.VMEM((num_heads, T, d_k), cdt),            # cached K per head
                pltpu.VMEM((num_heads, T, d_k), cdt),            # cached V per head
            ],
        ),
        compiler_params=pltpu.CompilerParams(
            dimension_semantics=("parallel", "arbitrary"),
            vmem_limit_bytes=64 * 1024 * 1024,
        ),
    )(
        x, x, bias,
        params["g1"], params["be1"],
        wq_h, bq_h, wk_h, bk_h, wv_h, bv_h, wo_h, params["bo"],
        params["g2"], params["be2"],
        w1, params["b1"], w2, params["b2"],
    )


def reference_jax(x, mask, params, *, num_heads):
    """Pure-JAX f32 reference mirroring the PyTorch module (eval mode)."""
    B, T, H = x.shape
    d_k = H // num_heads
    min_val = float(jnp.finfo(jnp.float32).min)

    def ln(y, g, b):
        mu = jnp.mean(y, axis=-1, keepdims=True)
        var = jnp.mean((y - mu) ** 2, axis=-1, keepdims=True)
        return (y - mu) / jnp.sqrt(var + 1e-12) * g + b

    residual = x
    xn = ln(x, params["g1"], params["be1"])
    q = xn @ params["wq"] + params["bq"]
    k = xn @ params["wk"] + params["bk"]
    v = xn @ params["wv"] + params["bv"]
    q = q.reshape(B, T, num_heads, d_k).transpose(0, 2, 1, 3)
    k = k.reshape(B, T, num_heads, d_k).transpose(0, 2, 1, 3)
    v = v.reshape(B, T, num_heads, d_k).transpose(0, 2, 1, 3)
    scores = jnp.einsum("bhqd,bhkd->bhqk", q, k) / math.sqrt(d_k)
    m = (mask[:, None, :, :] == 0)                  # (B,1,1,T)
    scores = jnp.where(m, min_val, scores)
    attn = jax.nn.softmax(scores, axis=-1)
    attn = jnp.where(m, 0.0, attn)
    ctx = jnp.einsum("bhqk,bhkd->bhqd", attn, v)
    ctx = ctx.transpose(0, 2, 1, 3).reshape(B, T, H)
    x = residual + (ctx @ params["wo"] + params["bo"])
    residual = x
    xn2 = ln(x, params["g2"], params["be2"])
    ffn = jnp.maximum(xn2 @ params["w1"] + params["b1"], 0.0) @ params["w2"] + params["b2"]
    return residual + ffn


def _make_params(keys, H, F):
    def w(k, shape, scale=0.1):
        return (scale * jax.random.normal(k, shape)).astype(jnp.float32)
    return {
        "g1": jnp.ones((1, H), jnp.float32), "be1": jnp.zeros((1, H), jnp.float32),
        "g2": jnp.ones((1, H), jnp.float32), "be2": jnp.zeros((1, H), jnp.float32),
        "wq": w(keys[0], (H, H)), "bq": w(keys[1], (1, H)),
        "wk": w(keys[2], (H, H)), "bk": w(keys[3], (1, H)),
        "wv": w(keys[4], (H, H)), "bv": w(keys[5], (1, H)),
        "wo": w(keys[6], (H, H)), "bo": w(keys[7], (1, H)),
        "w1": w(keys[8], (H, F)), "b1": w(keys[9], (1, F)),
        "w2": w(keys[10], (F, H)), "b2": w(keys[11], (1, H)),
    }


if __name__ == "__main__":
    def run_case(name, T, q_block, compute_dtype, tol):
        B, H, F, NH = 2, 32, 64, 4
        key = jax.random.PRNGKey(0)
        keys = jax.random.split(key, 16)
        params = _make_params(keys, H, F)
        x = jax.random.normal(keys[12], (B, T, H), dtype=jnp.float32)
        # mask: (B, 1, T); batch 0 fully valid, batch 1 partially padded at the end
        lengths = jnp.array([T, max(1, T - 3)])
        mask = (jnp.arange(T)[None, :] < lengths[:, None]).astype(jnp.int32)[:, None, :]

        out = transformer_encoder_layer(x, mask, params, num_heads=NH,
                                        q_block=q_block, compute_dtype=compute_dtype)
        out = jax.block_until_ready(out)
        ref = reference_jax(x, mask, params, num_heads=NH)
        assert out.shape == (B, T, H)
        err = float(jnp.max(jnp.abs(out - ref)))
        assert jnp.allclose(out, ref, atol=tol, rtol=tol), f"{name}: max abs err {err}"

    # Exercises the K/V cache across two query tiles, and the bf16 compute path.
    run_case("f32_two_qtiles", T=16, q_block=8, compute_dtype=jnp.float32, tol=5e-3)
    run_case("bf16_operands",  T=16, q_block=8, compute_dtype=jnp.bfloat16, tol=6e-2)

    print("KERNEL_OK")
</pallas_src>

<mosaic_0001>
module attributes {stable_mosaic.version = 11 : i64} {
  func.func @encoder_layer_kernel(%arg0: i32, %arg1: i32, %arg2: memref<1x8x32xf32, #tpu.memory_space<vmem>>, %arg3: memref<1x16x32xf32, #tpu.memory_space<vmem>>, %arg4: memref<1x1x16xf32, #tpu.memory_space<vmem>>, %arg5: memref<1x32xf32, #tpu.memory_space<vmem>>, %arg6: memref<1x32xf32, #tpu.memory_space<vmem>>, %arg7: memref<4x32x8xf32, #tpu.memory_space<vmem>>, %arg8: memref<4x1x8xf32, #tpu.memory_space<vmem>>, %arg9: memref<4x32x8xf32, #tpu.memory_space<vmem>>, %arg10: memref<4x1x8xf32, #tpu.memory_space<vmem>>, %arg11: memref<4x32x8xf32, #tpu.memory_space<vmem>>, %arg12: memref<4x1x8xf32, #tpu.memory_space<vmem>>, %arg13: memref<4x8x32xf32, #tpu.memory_space<vmem>>, %arg14: memref<1x32xf32, #tpu.memory_space<vmem>>, %arg15: memref<1x32xf32, #tpu.memory_space<vmem>>, %arg16: memref<1x32xf32, #tpu.memory_space<vmem>>, %arg17: memref<32x64xf32, #tpu.memory_space<vmem>>, %arg18: memref<1x64xf32, #tpu.memory_space<vmem>>, %arg19: memref<64x32xf32, #tpu.memory_space<vmem>>, %arg20: memref<1x32xf32, #tpu.memory_space<vmem>>, %arg21: memref<1x8x32xf32, #tpu.memory_space<vmem>>, %arg22: memref<4x16x8xf32, #tpu.memory_space<vmem>>, %arg23: memref<4x16x8xf32, #tpu.memory_space<vmem>>) attributes {dimension_semantics = [#tpu.dimension_semantics<parallel>, #tpu.dimension_semantics<arbitrary>], iteration_bounds = array<i64: 2, 2>, scalar_prefetch = 0 : i64, scratch_operands = 2 : i64, tpu.core_type = #tpu.core_type<tc>, window_params = [{transform_indices = @transform_0, window_bounds = array<i64: 1, 8, 32>}, {transform_indices = @transform_1, window_bounds = array<i64: 1, 16, 32>}, {transform_indices = @transform_2, window_bounds = array<i64: 1, 1, 16>}, {pipeline_mode = #tpu.pipeline_mode<synchronous>, transform_indices = @transform_3, window_bounds = array<i64: 1, 32>}, {pipeline_mode = #tpu.pipeline_mode<synchronous>, transform_indices = @transform_4, window_bounds = array<i64: 1, 32>}, {pipeline_mode = #tpu.pipeline_mode<synchronous>, transform_indices = @transform_5, window_bounds = array<i64: 4, 32, 8>}, {pipeline_mode = #tpu.pipeline_mode<synchronous>, transform_indices = @transform_6, window_bounds = array<i64: 4, 1, 8>}, {pipeline_mode = #tpu.pipeline_mode<synchronous>, transform_indices = @transform_7, window_bounds = array<i64: 4, 32, 8>}, {pipeline_mode = #tpu.pipeline_mode<synchronous>, transform_indices = @transform_8, window_bounds = array<i64: 4, 1, 8>}, {pipeline_mode = #tpu.pipeline_mode<synchronous>, transform_indices = @transform_9, window_bounds = array<i64: 4, 32, 8>}, {pipeline_mode = #tpu.pipeline_mode<synchronous>, transform_indices = @transform_10, window_bounds = array<i64: 4, 1, 8>}, {pipeline_mode = #tpu.pipeline_mode<synchronous>, transform_indices = @transform_11, window_bounds = array<i64: 4, 8, 32>}, {pipeline_mode = #tpu.pipeline_mode<synchronous>, transform_indices = @transform_12, window_bounds = array<i64: 1, 32>}, {pipeline_mode = #tpu.pipeline_mode<synchronous>, transform_indices = @transform_13, window_bounds = array<i64: 1, 32>}, {pipeline_mode = #tpu.pipeline_mode<synchronous>, transform_indices = @transform_14, window_bounds = array<i64: 1, 32>}, {pipeline_mode = #tpu.pipeline_mode<synchronous>, transform_indices = @transform_15, window_bounds = array<i64: 32, 64>}, {pipeline_mode = #tpu.pipeline_mode<synchronous>, transform_indices = @transform_16, window_bounds = array<i64: 1, 64>}, {pipeline_mode = #tpu.pipeline_mode<synchronous>, transform_indices = @transform_17, window_bounds = array<i64: 64, 32>}, {pipeline_mode = #tpu.pipeline_mode<synchronous>, transform_indices = @transform_18, window_bounds = array<i64: 1, 32>}, {transform_indices = @transform_19, window_bounds = array<i64: 1, 8, 32>}]} {
    %c0 = arith.constant 0 : index
    %c0_0 = arith.constant 0 : index
    %0 = vector.load %arg5[%c0, %c0_0] : memref<1x32xf32, #tpu.memory_space<vmem>>, vector<1x32xf32>
    %c0_1 = arith.constant 0 : index
    %c0_2 = arith.constant 0 : index
    %1 = vector.load %arg6[%c0_1, %c0_2] : memref<1x32xf32, #tpu.memory_space<vmem>>, vector<1x32xf32>
    %c0_i32 = arith.constant 0 : i32
    %2 = arith.cmpi eq, %arg1, %c0_i32 : i32
    %3 = arith.extui %2 : i1 to i32
    %c0_i32_3 = arith.constant 0 : i32
    %4 = arith.cmpi ne, %3, %c0_i32_3 : i32
    scf.if %4 {
      %c0_127 = arith.constant 0 : index
      %c0_128 = arith.constant 0 : index
      %c0_129 = arith.constant 0 : index
      %208 = vector.load %arg3[%c0_127, %c0_128, %c0_129] : memref<1x16x32xf32, #tpu.memory_space<vmem>>, vector<1x16x32xf32>
      %209 = vector.shape_cast %208 : vector<1x16x32xf32> to vector<16x32xf32>
      %cst_130 = arith.constant dense<0.000000e+00> : vector<16xf32>
      %210 = vector.multi_reduction <add>, %209, %cst_130 [1] : vector<16x32xf32> to vector<16xf32>
      %211 = vector.shape_cast %210 : vector<16xf32> to vector<16x1xf32>
      %cst_131 = arith.constant 3.200000e+01 : f32
      %212 = vector.broadcast %cst_131 : f32 to vector<16x1xf32>
      %213 = arith.divf %211, %212 : vector<16x1xf32>
      %214 = vector.broadcast %213 : vector<16x1xf32> to vector<16x32xf32>
      %215 = arith.subf %209, %214 : vector<16x32xf32>
      %216 = arith.mulf %215, %215 : vector<16x32xf32>
      %cst_132 = arith.constant dense<0.000000e+00> : vector<16xf32>
      %217 = vector.multi_reduction <add>, %216, %cst_132 [1] : vector<16x32xf32> to vector<16xf32>
      %218 = vector.shape_cast %217 : vector<16xf32> to vector<16x1xf32>
      %cst_133 = arith.constant 3.200000e+01 : f32
      %219 = vector.broadcast %cst_133 : f32 to vector<16x1xf32>
      %220 = arith.divf %218, %219 : vector<16x1xf32>
      %221 = vector.broadcast %213 : vector<16x1xf32> to vector<16x32xf32>
      %222 = arith.subf %209, %221 : vector<16x32xf32>
      %cst_134 = arith.constant 9.99999996E-13 : f32
      %223 = vector.broadcast %cst_134 : f32 to vector<16x1xf32>
      %224 = arith.addf %220, %223 : vector<16x1xf32>
      %225 = math.rsqrt %224 : vector<16x1xf32>
      %226 = vector.broadcast %225 : vector<16x1xf32> to vector<16x32xf32>
      %227 = arith.mulf %222, %226 : vector<16x32xf32>
      %228 = vector.broadcast %0 : vector<1x32xf32> to vector<16x32xf32>
      %229 = arith.mulf %227, %228 : vector<16x32xf32>
      %230 = vector.broadcast %1 : vector<1x32xf32> to vector<16x32xf32>
      %231 = arith.addf %229, %230 : vector<16x32xf32>
      %c0_135 = arith.constant 0 : index
      %c0_136 = arith.constant 0 : index
      %c0_137 = arith.constant 0 : index
      %232 = vector.load %arg9[%c0_135, %c0_136, %c0_137] : memref<4x32x8xf32, #tpu.memory_space<vmem>>, vector<1x32x8xf32>
      %233 = vector.shape_cast %232 : vector<1x32x8xf32> to vector<32x8xf32>
      %cst_138 = arith.constant dense<0.000000e+00> : vector<16x8xf32>
      %234 = tpu.matmul %231, %233, %cst_138 {dimension_numbers = #tpu.dot_dimension_numbers<[1], [0], [0], [1], [0, 0, 1, 1], [], []>} : vector<16x32xf32>, vector<32x8xf32>, vector<16x8xf32> -> vector<16x8xf32>
      %c0_139 = arith.constant 0 : index
      %c0_140 = arith.constant 0 : index
      %c0_141 = arith.constant 0 : index
      %235 = vector.load %arg10[%c0_139, %c0_140, %c0_141] : memref<4x1x8xf32, #tpu.memory_space<vmem>>, vector<1x1x8xf32>
      %236 = vector.shape_cast %235 : vector<1x1x8xf32> to vector<1x8xf32>
      %237 = vector.broadcast %236 : vector<1x8xf32> to vector<16x8xf32>
      %238 = arith.addf %234, %237 : vector<16x8xf32>
      %c0_142 = arith.constant 0 : index
      %c0_143 = arith.constant 0 : index
      %c0_144 = arith.constant 0 : index
      %239 = vector.load %arg22[%c0_142, %c0_143, %c0_144] : memref<4x16x8xf32, #tpu.memory_space<vmem>>, vector<1x16x8xf32>
      %240 = vector.shape_cast %239 : vector<1x16x8xf32> to vector<16x8xf32>
      %241 = vector.shape_cast %238 : vector<16x8xf32> to vector<1x16x8xf32>
      tpu.vector_store %arg22[%c0_142, %c0_143, %c0_144], %241 {strides = array<i32>} : memref<4x16x8xf32, #tpu.memory_space<vmem>>, vector<1x16x8xf32>,
      %c0_145 = arith.constant 0 : index
      %c0_146 = arith.constant 0 : index
      %c0_147 = arith.constant 0 : index
      %242 = vector.load %arg11[%c0_145, %c0_146, %c0_147] : memref<4x32x8xf32, #tpu.memory_space<vmem>>, vector<1x32x8xf32>
      %243 = vector.shape_cast %242 : vector<1x32x8xf32> to vector<32x8xf32>
      %cst_148 = arith.constant dense<0.000000e+00> : vector<16x8xf32>
      %244 = tpu.matmul %231, %243, %cst_148 {dimension_numbers = #tpu.dot_dimension_numbers<[1], [0], [0], [1], [0, 0, 1, 1], [], []>} : vector<16x32xf32>, vector<32x8xf32>, vector<16x8xf32> -> vector<16x8xf32>
      %c0_149 = arith.constant 0 : index
      %c0_150 = arith.constant 0 : index
      %c0_151 = arith.constant 0 : index
      %245 = vector.load %arg12[%c0_149, %c0_150, %c0_151] : memref<4x1x8xf32, #tpu.memory_space<vmem>>, vector<1x1x8xf32>
      %246 = vector.shape_cast %245 : vector<1x1x8xf32> to vector<1x8xf32>
      %247 = vector.broadcast %246 : vector<1x8xf32> to vector<16x8xf32>
      %248 = arith.addf %244, %247 : vector<16x8xf32>
      %c0_152 = arith.constant 0 : index
      %c0_153 = arith.constant 0 : index
      %c0_154 = arith.constant 0 : index
      %249 = vector.load %arg23[%c0_152, %c0_153, %c0_154] : memref<4x16x8xf32, #tpu.memory_space<vmem>>, vector<1x16x8xf32>
      %250 = vector.shape_cast %249 : vector<1x16x8xf32> to vector<16x8xf32>
      %251 = vector.shape_cast %248 : vector<16x8xf32> to vector<1x16x8xf32>
      tpu.vector_store %arg23[%c0_152, %c0_153, %c0_154], %251 {strides = array<i32>} : memref<4x16x8xf32, #tpu.memory_space<vmem>>, vector<1x16x8xf32>,
      %c1_155 = arith.constant 1 : index
      %c0_156 = arith.constant 0 : index
      %c0_157 = arith.constant 0 : index
      %252 = vector.load %arg9[%c1_155, %c0_156, %c0_157] : memref<4x32x8xf32, #tpu.memory_space<vmem>>, vector<1x32x8xf32>
      %253 = vector.shape_cast %252 : vector<1x32x8xf32> to vector<32x8xf32>
      %cst_158 = arith.constant dense<0.000000e+00> : vector<16x8xf32>
      %254 = tpu.matmul %231, %253, %cst_158 {dimension_numbers = #tpu.dot_dimension_numbers<[1], [0], [0], [1], [0, 0, 1, 1], [], []>} : vector<16x32xf32>, vector<32x8xf32>, vector<16x8xf32> -> vector<16x8xf32>
      %c1_159 = arith.constant 1 : index
      %c0_160 = arith.constant 0 : index
      %c0_161 = arith.constant 0 : index
      %255 = vector.load %arg10[%c1_159, %c0_160, %c0_161] : memref<4x1x8xf32, #tpu.memory_space<vmem>>, vector<1x1x8xf32>
      %256 = vector.shape_cast %255 : vector<1x1x8xf32> to vector<1x8xf32>
      %257 = vector.broadcast %256 : vector<1x8xf32> to vector<16x8xf32>
      %258 = arith.addf %254, %257 : vector<16x8xf32>
      %c1_162 = arith.constant 1 : index
      %c0_163 = arith.constant 0 : index
      %c0_164 = arith.constant 0 : index
      %259 = vector.load %arg22[%c1_162, %c0_163, %c0_164] : memref<4x16x8xf32, #tpu.memory_space<vmem>>, vector<1x16x8xf32>
      %260 = vector.shape_cast %259 : vector<1x16x8xf32> to vector<16x8xf32>
      %261 = vector.shape_cast %258 : vector<16x8xf32> to vector<1x16x8xf32>
      tpu.vector_store %arg22[%c1_162, %c0_163, %c0_164], %261 {strides = array<i32>} : memref<4x16x8xf32, #tpu.memory_space<vmem>>, vector<1x16x8xf32>,
      %c1_165 = arith.constant 1 : index
      %c0_166 = arith.constant 0 : index
      %c0_167 = arith.constant 0 : index
      %262 = vector.load %arg11[%c1_165, %c0_166, %c0_167] : memref<4x32x8xf32, #tpu.memory_space<vmem>>, vector<1x32x8xf32>
      %263 = vector.shape_cast %262 : vector<1x32x8xf32> to vector<32x8xf32>
      %cst_168 = arith.constant dense<0.000000e+00> : vector<16x8xf32>
      %264 = tpu.matmul %231, %263, %cst_168 {dimension_numbers = #tpu.dot_dimension_numbers<[1], [0], [0], [1], [0, 0, 1, 1], [], []>} : vector<16x32xf32>, vector<32x8xf32>, vector<16x8xf32> -> vector<16x8xf32>
      %c1_169 = arith.constant 1 : index
      %c0_170 = arith.constant 0 : index
      %c0_171 = arith.constant 0 : index
      %265 = vector.load %arg12[%c1_169, %c0_170, %c0_171] : memref<4x1x8xf32, #tpu.memory_space<vmem>>, vector<1x1x8xf32>
      %266 = vector.shape_cast %265 : vector<1x1x8xf32> to vector<1x8xf32>
      %267 = vector.broadcast %266 : vector<1x8xf32> to vector<16x8xf32>
      %268 = arith.addf %264, %267 : vector<16x8xf32>
      %c1_172 = arith.constant 1 : index
      %c0_173 = arith.constant 0 : index
      %c0_174 = arith.constant 0 : index
      %269 = vector.load %arg23[%c1_172, %c0_173, %c0_174] : memref<4x16x8xf32, #tpu.memory_space<vmem>>, vector<1x16x8xf32>
      %270 = vector.shape_cast %269 : vector<1x16x8xf32> to vector<16x8xf32>
      %271 = vector.shape_cast %268 : vector<16x8xf32> to vector<1x16x8xf32>
      tpu.vector_store %arg23[%c1_172, %c0_173, %c0_174], %271 {strides = array<i32>} : memref<4x16x8xf32, #tpu.memory_space<vmem>>, vector<1x16x8xf32>,
      %c2_175 = arith.constant 2 : index
      %c0_176 = arith.constant 0 : index
      %c0_177 = arith.constant 0 : index
      %272 = vector.load %arg9[%c2_175, %c0_176, %c0_177] : memref<4x32x8xf32, #tpu.memory_space<vmem>>, vector<1x32x8xf32>
      %273 = vector.shape_cast %272 : vector<1x32x8xf32> to vector<32x8xf32>
      %cst_178 = arith.constant dense<0.000000e+00> : vector<16x8xf32>
      %274 = tpu.matmul %231, %273, %cst_178 {dimension_numbers = #tpu.dot_dimension_numbers<[1], [0], [0], [1], [0, 0, 1, 1], [], []>} : vector<16x32xf32>, vector<32x8xf32>, vector<16x8xf32> -> vector<16x8xf32>
      %c2_179 = arith.constant 2 : index
      %c0_180 = arith.constant 0 : index
      %c0_181 = arith.constant 0 : index
      %275 = vector.load %arg10[%c2_179, %c0_180, %c0_181] : memref<4x1x8xf32, #tpu.memory_space<vmem>>, vector<1x1x8xf32>
      %276 = vector.shape_cast %275 : vector<1x1x8xf32> to vector<1x8xf32>
      %277 = vector.broadcast %276 : vector<1x8xf32> to vector<16x8xf32>
      %278 = arith.addf %274, %277 : vector<16x8xf32>
      %c2_182 = arith.constant 2 : index
      %c0_183 = arith.constant 0 : index
      %c0_184 = arith.constant 0 : index
      %279 = vector.load %arg22[%c2_182, %c0_183, %c0_184] : memref<4x16x8xf32, #tpu.memory_space<vmem>>, vector<1x16x8xf32>
      %280 = vector.shape_cast %279 : vector<1x16x8xf32> to vector<16x8xf32>
      %281 = vector.shape_cast %278 : vector<16x8xf32> to vector<1x16x8xf32>
      tpu.vector_store %arg22[%c2_182, %c0_183, %c0_184], %281 {strides = array<i32>} : memref<4x16x8xf32, #tpu.memory_space<vmem>>, vector<1x16x8xf32>,
      %c2_185 = arith.constant 2 : index
      %c0_186 = arith.constant 0 : index
      %c0_187 = arith.constant 0 : index
      %282 = vector.load %arg11[%c2_185, %c0_186, %c0_187] : memref<4x32x8xf32, #tpu.memory_space<vmem>>, vector<1x32x8xf32>
      %283 = vector.shape_cast %282 : vector<1x32x8xf32> to vector<32x8xf32>
      %cst_188 = arith.constant dense<0.000000e+00> : vector<16x8xf32>
      %284 = tpu.matmul %231, %283, %cst_188 {dimension_numbers = #tpu.dot_dimension_numbers<[1], [0], [0], [1], [0, 0, 1, 1], [], []>} : vector<16x32xf32>, vector<32x8xf32>, vector<16x8xf32> -> vector<16x8xf32>
      %c2_189 = arith.constant 2 : index
      %c0_190 = arith.constant 0 : index
      %c0_191 = arith.constant 0 : index
      %285 = vector.load %arg12[%c2_189, %c0_190, %c0_191] : memref<4x1x8xf32, #tpu.memory_space<vmem>>, vector<1x1x8xf32>
      %286 = vector.shape_cast %285 : vector<1x1x8xf32> to vector<1x8xf32>
      %287 = vector.broadcast %286 : vector<1x8xf32> to vector<16x8xf32>
      %288 = arith.addf %284, %287 : vector<16x8xf32>
      %c2_192 = arith.constant 2 : index
      %c0_193 = arith.constant 0 : index
      %c0_194 = arith.constant 0 : index
      %289 = vector.load %arg23[%c2_192, %c0_193, %c0_194] : memref<4x16x8xf32, #tpu.memory_space<vmem>>, vector<1x16x8xf32>
      %290 = vector.shape_cast %289 : vector<1x16x8xf32> to vector<16x8xf32>
      %291 = vector.shape_cast %288 : vector<16x8xf32> to vector<1x16x8xf32>
      tpu.vector_store %arg23[%c2_192, %c0_193, %c0_194], %291 {strides = array<i32>} : memref<4x16x8xf32, #tpu.memory_space<vmem>>, vector<1x16x8xf32>,
      %c3_195 = arith.constant 3 : index
      %c0_196 = arith.constant 0 : index
      %c0_197 = arith.constant 0 : index
      %292 = vector.load %arg9[%c3_195, %c0_196, %c0_197] : memref<4x32x8xf32, #tpu.memory_space<vmem>>, vector<1x32x8xf32>
      %293 = vector.shape_cast %292 : vector<1x32x8xf32> to vector<32x8xf32>
      %cst_198 = arith.constant dense<0.000000e+00> : vector<16x8xf32>
      %294 = tpu.matmul %231, %293, %cst_198 {dimension_numbers = #tpu.dot_dimension_numbers<[1], [0], [0], [1], [0, 0, 1, 1], [], []>} : vector<16x32xf32>, vector<32x8xf32>, vector<16x8xf32> -> vector<16x8xf32>
      %c3_199 = arith.constant 3 : index
      %c0_200 = arith.constant 0 : index
      %c0_201 = arith.constant 0 : index
      %295 = vector.load %arg10[%c3_199, %c0_200, %c0_201] : memref<4x1x8xf32, #tpu.memory_space<vmem>>, vector<1x1x8xf32>
      %296 = vector.shape_cast %295 : vector<1x1x8xf32> to vector<1x8xf32>
      %297 = vector.broadcast %296 : vector<1x8xf32> to vector<16x8xf32>
      %298 = arith.addf %294, %297 : vector<16x8xf32>
      %c3_202 = arith.constant 3 : index
      %c0_203 = arith.constant 0 : index
      %c0_204 = arith.constant 0 : index
      %299 = vector.load %arg22[%c3_202, %c0_203, %c0_204] : memref<4x16x8xf32, #tpu.memory_space<vmem>>, vector<1x16x8xf32>
      %300 = vector.shape_cast %299 : vector<1x16x8xf32> to vector<16x8xf32>
      %301 = vector.shape_cast %298 : vector<16x8xf32> to vector<1x16x8xf32>
      tpu.vector_store %arg22[%c3_202, %c0_203, %c0_204], %301 {strides = array<i32>} : memref<4x16x8xf32, #tpu.memory_space<vmem>>, vector<1x16x8xf32>,
      %c3_205 = arith.constant 3 : index
      %c0_206 = arith.constant 0 : index
      %c0_207 = arith.constant 0 : index
      %302 = vector.load %arg11[%c3_205, %c0_206, %c0_207] : memref<4x32x8xf32, #tpu.memory_space<vmem>>, vector<1x32x8xf32>
      %303 = vector.shape_cast %302 : vector<1x32x8xf32> to vector<32x8xf32>
      %cst_208 = arith.constant dense<0.000000e+00> : vector<16x8xf32>
      %304 = tpu.matmul %231, %303, %cst_208 {dimension_numbers = #tpu.dot_dimension_numbers<[1], [0], [0], [1], [0, 0, 1, 1], [], []>} : vector<16x32xf32>, vector<32x8xf32>, vector<16x8xf32> -> vector<16x8xf32>
      %c3_209 = arith.constant 3 : index
      %c0_210 = arith.constant 0 : index
      %c0_211 = arith.constant 0 : index
      %305 = vector.load %arg12[%c3_209, %c0_210, %c0_211] : memref<4x1x8xf32, #tpu.memory_space<vmem>>, vector<1x1x8xf32>
      %306 = vector.shape_cast %305 : vector<1x1x8xf32> to vector<1x8xf32>
      %307 = vector.broadcast %306 : vector<1x8xf32> to vector<16x8xf32>
      %308 = arith.addf %304, %307 : vector<16x8xf32>
      %c3_212 = arith.constant 3 : index
      %c0_213 = arith.constant 0 : index
      %c0_214 = arith.constant 0 : index
      %309 = vector.load %arg23[%c3_212, %c0_213, %c0_214] : memref<4x16x8xf32, #tpu.memory_space<vmem>>, vector<1x16x8xf32>
      %310 = vector.shape_cast %309 : vector<1x16x8xf32> to vector<16x8xf32>
      %311 = vector.shape_cast %308 : vector<16x8xf32> to vector<1x16x8xf32>
      tpu.vector_store %arg23[%c3_212, %c0_213, %c0_214], %311 {strides = array<i32>} : memref<4x16x8xf32, #tpu.memory_space<vmem>>, vector<1x16x8xf32>,
    } else {
    }
    %c0_4 = arith.constant 0 : index
    %c0_5 = arith.constant 0 : index
    %c0_6 = arith.constant 0 : index
    %5 = vector.load %arg2[%c0_4, %c0_5, %c0_6] : memref<1x8x32xf32, #tpu.memory_space<vmem>>, vector<1x8x32xf32>
    %6 = vector.shape_cast %5 : vector<1x8x32xf32> to vector<8x32xf32>
    %c0_7 = arith.constant 0 : index
    %c0_8 = arith.constant 0 : index
    %c0_9 = arith.constant 0 : index
    %7 = vector.load %arg4[%c0_7, %c0_8, %c0_9] : memref<1x1x16xf32, #tpu.memory_space<vmem>>, vector<1x1x16xf32>
    %8 = vector.shape_cast %7 : vector<1x1x16xf32> to vector<1x16xf32>
    %cst = arith.constant dense<0.000000e+00> : vector<8xf32>
    %9 = vector.multi_reduction <add>, %6, %cst [1] : vector<8x32xf32> to vector<8xf32>
    %10 = vector.shape_cast %9 : vector<8xf32> to vector<8x1xf32>
    %cst_10 = arith.constant 3.200000e+01 : f32
    %11 = vector.broadcast %cst_10 : f32 to vector<8x1xf32>
    %12 = arith.divf %10, %11 : vector<8x1xf32>
    %13 = vector.broadcast %12 : vector<8x1xf32> to vector<8x32xf32>
    %14 = arith.subf %6, %13 : vector<8x32xf32>
    %15 = arith.mulf %14, %14 : vector<8x32xf32>
    %cst_11 = arith.constant dense<0.000000e+00> : vector<8xf32>
    %16 = vector.multi_reduction <add>, %15, %cst_11 [1] : vector<8x32xf32> to vector<8xf32>
    %17 = vector.shape_cast %16 : vector<8xf32> to vector<8x1xf32>
    %cst_12 = arith.constant 3.200000e+01 : f32
    %18 = vector.broadcast %cst_12 : f32 to vector<8x1xf32>
    %19 = arith.divf %17, %18 : vector<8x1xf32>
    %20 = vector.broadcast %12 : vector<8x1xf32> to vector<8x32xf32>
    %21 = arith.subf %6, %20 : vector<8x32xf32>
    %cst_13 = arith.constant 9.99999996E-13 : f32
    %22 = vector.broadcast %cst_13 : f32 to vector<8x1xf32>
    %23 = arith.addf %19, %22 : vector<8x1xf32>
    %24 = math.rsqrt %23 : vector<8x1xf32>
    %25 = vector.broadcast %24 : vector<8x1xf32> to vector<8x32xf32>
    %26 = arith.mulf %21, %25 : vector<8x32xf32>
    %27 = vector.broadcast %0 : vector<1x32xf32> to vector<8x32xf32>
    %28 = arith.mulf %26, %27 : vector<8x32xf32>
    %29 = vector.broadcast %1 : vector<1x32xf32> to vector<8x32xf32>
    %30 = arith.addf %28, %29 : vector<8x32xf32>
    %cst_14 = arith.constant dense<0xFF800000> : vector<1xf32>
    %31 = vector.multi_reduction <maximumf>, %8, %cst_14 [1] : vector<1x16xf32> to vector<1xf32>
    %32 = vector.shape_cast %31 : vector<1xf32> to vector<1x1xf32>
    %cst_15 = arith.constant -1.000000e+00 : f32
    %33 = vector.broadcast %cst_15 : f32 to vector<1x1xf32>
    %34 = arith.cmpf ogt, %32, %33 : vector<1x1xf32>
    %35 = arith.extui %34 : vector<1x1xi1> to vector<1x1xi32>
    %36 = arith.sitofp %35 : vector<1x1xi32> to vector<1x1xf32>
    %cst_16 = arith.constant 0.000000e+00 : f32
    %37 = vector.broadcast %cst_16 : f32 to vector<8x32xf32>
    %c0_17 = arith.constant 0 : index
    %c0_18 = arith.constant 0 : index
    %c0_19 = arith.constant 0 : index
    %38 = vector.load %arg7[%c0_17, %c0_18, %c0_19] : memref<4x32x8xf32, #tpu.memory_space<vmem>>, vector<1x32x8xf32>
    %39 = vector.shape_cast %38 : vector<1x32x8xf32> to vector<32x8xf32>
    %cst_20 = arith.constant dense<0.000000e+00> : vector<8x8xf32>
    %40 = tpu.matmul %30, %39, %cst_20 {dimension_numbers = #tpu.dot_dimension_numbers<[1], [0], [0], [1], [0, 0, 1, 1], [], []>} : vector<8x32xf32>, vector<32x8xf32>, vector<8x8xf32> -> vector<8x8xf32>
    %c0_21 = arith.constant 0 : index
    %c0_22 = arith.constant 0 : index
    %c0_23 = arith.constant 0 : index
    %41 = vector.load %arg8[%c0_21, %c0_22, %c0_23] : memref<4x1x8xf32, #tpu.memory_space<vmem>>, vector<1x1x8xf32>
    %42 = vector.shape_cast %41 : vector<1x1x8xf32> to vector<1x8xf32>
    %43 = vector.broadcast %42 : vector<1x8xf32> to vector<8x8xf32>
    %44 = arith.addf %40, %43 : vector<8x8xf32>
    %cst_24 = arith.constant 0.353553385 : f32
    %45 = vector.broadcast %cst_24 : f32 to vector<8x8xf32>
    %46 = arith.mulf %44, %45 : vector<8x8xf32>
    %c0_25 = arith.constant 0 : index
    %c0_26 = arith.constant 0 : index
    %c0_27 = arith.constant 0 : index
    %47 = vector.load %arg22[%c0_25, %c0_26, %c0_27] : memref<4x16x8xf32, #tpu.memory_space<vmem>>, vector<1x16x8xf32>
    %48 = vector.shape_cast %47 : vector<1x16x8xf32> to vector<16x8xf32>
    %c0_28 = arith.constant 0 : index
    %c0_29 = arith.constant 0 : index
    %c0_30 = arith.constant 0 : index
    %49 = vector.load %arg23[%c0_28, %c0_29, %c0_30] : memref<4x16x8xf32, #tpu.memory_space<vmem>>, vector<1x16x8xf32>
    %50 = vector.shape_cast %49 : vector<1x16x8xf32> to vector<16x8xf32>
    %cst_31 = arith.constant dense<0.000000e+00> : vector<8x16xf32>
    %51 = tpu.matmul %46, %48, %cst_31 {dimension_numbers = #tpu.dot_dimension_numbers<[1], [1], [0], [0], [0, 0, 1, 0], [], []>} : vector<8x8xf32>, vector<16x8xf32>, vector<8x16xf32> -> vector<8x16xf32>
    %52 = vector.broadcast %8 : vector<1x16xf32> to vector<8x16xf32>
    %53 = arith.addf %51, %52 : vector<8x16xf32>
    %cst_32 = arith.constant dense<0xFF800000> : vector<8xf32>
    %54 = vector.multi_reduction <maximumf>, %53, %cst_32 [1] : vector<8x16xf32> to vector<8xf32>
    %55 = vector.shape_cast %54 : vector<8xf32> to vector<8x1xf32>
    %56 = vector.broadcast %55 : vector<8x1xf32> to vector<8x16xf32>
    %57 = arith.subf %53, %56 : vector<8x16xf32>
    %58 = math.exp %57 : vector<8x16xf32>
    %cst_33 = arith.constant dense<0.000000e+00> : vector<8xf32>
    %59 = vector.multi_reduction <add>, %58, %cst_33 [1] : vector<8x16xf32> to vector<8xf32>
    %60 = vector.shape_cast %59 : vector<8xf32> to vector<8x1xf32>
    %61 = tpu.reciprocal %60 {approx = true} : vector<8x1xf32> -> vector<8x1xf32>
    %62 = vector.broadcast %61 : vector<8x1xf32> to vector<8x16xf32>
    %63 = arith.mulf %58, %62 : vector<8x16xf32>
    %cst_34 = arith.constant dense<0.000000e+00> : vector<8x8xf32>
    %64 = tpu.matmul %63, %50, %cst_34 {dimension_numbers = #tpu.dot_dimension_numbers<[1], [0], [0], [1], [0, 0, 1, 1], [], []>} : vector<8x16xf32>, vector<16x8xf32>, vector<8x8xf32> -> vector<8x8xf32>
    %c0_35 = arith.constant 0 : index
    %c0_36 = arith.constant 0 : index
    %c0_37 = arith.constant 0 : index
    %65 = vector.load %arg13[%c0_35, %c0_36, %c0_37] : memref<4x8x32xf32, #tpu.memory_space<vmem>>, vector<1x8x32xf32>
    %66 = vector.shape_cast %65 : vector<1x8x32xf32> to vector<8x32xf32>
    %cst_38 = arith.constant dense<0.000000e+00> : vector<8x32xf32>
    %67 = tpu.matmul %64, %66, %cst_38 {dimension_numbers = #tpu.dot_dimension_numbers<[1], [0], [0], [1], [0, 0, 1, 1], [], []>} : vector<8x8xf32>, vector<8x32xf32>, vector<8x32xf32> -> vector<8x32xf32>
    %68 = arith.addf %37, %67 : vector<8x32xf32>
    %c1 = arith.constant 1 : index
    %c0_39 = arith.constant 0 : index
    %c0_40 = arith.constant 0 : index
    %69 = vector.load %arg7[%c1, %c0_39, %c0_40] : memref<4x32x8xf32, #tpu.memory_space<vmem>>, vector<1x32x8xf32>
    %70 = vector.shape_cast %69 : vector<1x32x8xf32> to vector<32x8xf32>
    %cst_41 = arith.constant dense<0.000000e+00> : vector<8x8xf32>
    %71 = tpu.matmul %30, %70, %cst_41 {dimension_numbers = #tpu.dot_dimension_numbers<[1], [0], [0], [1], [0, 0, 1, 1], [], []>} : vector<8x32xf32>, vector<32x8xf32>, vector<8x8xf32> -> vector<8x8xf32>
    %c1_42 = arith.constant 1 : index
    %c0_43 = arith.constant 0 : index
    %c0_44 = arith.constant 0 : index
    %72 = vector.load %arg8[%c1_42, %c0_43, %c0_44] : memref<4x1x8xf32, #tpu.memory_space<vmem>>, vector<1x1x8xf32>
    %73 = vector.shape_cast %72 : vector<1x1x8xf32> to vector<1x8xf32>
    %74 = vector.broadcast %73 : vector<1x8xf32> to vector<8x8xf32>
    %75 = arith.addf %71, %74 : vector<8x8xf32>
    %cst_45 = arith.constant 0.353553385 : f32
    %76 = vector.broadcast %cst_45 : f32 to vector<8x8xf32>
    %77 = arith.mulf %75, %76 : vector<8x8xf32>
    %c1_46 = arith.constant 1 : index
    %c0_47 = arith.constant 0 : index
    %c0_48 = arith.constant 0 : index
    %78 = vector.load %arg22[%c1_46, %c0_47, %c0_48] : memref<4x16x8xf32, #tpu.memory_space<vmem>>, vector<1x16x8xf32>
    %79 = vector.shape_cast %78 : vector<1x16x8xf32> to vector<16x8xf32>
    %c1_49 = arith.constant 1 : index
    %c0_50 = arith.constant 0 : index
    %c0_51 = arith.constant 0 : index
    %80 = vector.load %arg23[%c1_49, %c0_50, %c0_51] : memref<4x16x8xf32, #tpu.memory_space<vmem>>, vector<1x16x8xf32>
    %81 = vector.shape_cast %80 : vector<1x16x8xf32> to vector<16x8xf32>
    %cst_52 = arith.constant dense<0.000000e+00> : vector<8x16xf32>
    %82 = tpu.matmul %77, %79, %cst_52 {dimension_numbers = #tpu.dot_dimension_numbers<[1], [1], [0], [0], [0, 0, 1, 0], [], []>} : vector<8x8xf32>, vector<16x8xf32>, vector<8x16xf32> -> vector<8x16xf32>
    %83 = vector.broadcast %8 : vector<1x16xf32> to vector<8x16xf32>
    %84 = arith.addf %82, %83 : vector<8x16xf32>
    %cst_53 = arith.constant dense<0xFF800000> : vector<8xf32>
    %85 = vector.multi_reduction <maximumf>, %84, %cst_53 [1] : vector<8x16xf32> to vector<8xf32>
    %86 = vector.shape_cast %85 : vector<8xf32> to vector<8x1xf32>
    %87 = vector.broadcast %86 : vector<8x1xf32> to vector<8x16xf32>
    %88 = arith.subf %84, %87 : vector<8x16xf32>
    %89 = math.exp %88 : vector<8x16xf32>
    %cst_54 = arith.constant dense<0.000000e+00> : vector<8xf32>
    %90 = vector.multi_reduction <add>, %89, %cst_54 [1] : vector<8x16xf32> to vector<8xf32>
    %91 = vector.shape_cast %90 : vector<8xf32> to vector<8x1xf32>
    %92 = tpu.reciprocal %91 {approx = true} : vector<8x1xf32> -> vector<8x1xf32>
    %93 = vector.broadcast %92 : vector<8x1xf32> to vector<8x16xf32>
    %94 = arith.mulf %89, %93 : vector<8x16xf32>
    %cst_55 = arith.constant dense<0.000000e+00> : vector<8x8xf32>
    %95 = tpu.matmul %94, %81, %cst_55 {dimension_numbers = #tpu.dot_dimension_numbers<[1], [0], [0], [1], [0, 0, 1, 1], [], []>} : vector<8x16xf32>, vector<16x8xf32>, vector<8x8xf32> -> vector<8x8xf32>
    %c1_56 = arith.constant 1 : index
    %c0_57 = arith.constant 0 : index
    %c0_58 = arith.constant 0 : index
    %96 = vector.load %arg13[%c1_56, %c0_57, %c0_58] : memref<4x8x32xf32, #tpu.memory_space<vmem>>, vector<1x8x32xf32>
    %97 = vector.shape_cast %96 : vector<1x8x32xf32> to vector<8x32xf32>
    %cst_59 = arith.constant dense<0.000000e+00> : vector<8x32xf32>
    %98 = tpu.matmul %95, %97, %cst_59 {dimension_numbers = #tpu.dot_dimension_numbers<[1], [0], [0], [1], [0, 0, 1, 1], [], []>} : vector<8x8xf32>, vector<8x32xf32>, vector<8x32xf32> -> vector<8x32xf32>
    %99 = arith.addf %68, %98 : vector<8x32xf32>
    %c2 = arith.constant 2 : index
    %c0_60 = arith.constant 0 : index
    %c0_61 = arith.constant 0 : index
    %100 = vector.load %arg7[%c2, %c0_60, %c0_61] : memref<4x32x8xf32, #tpu.memory_space<vmem>>, vector<1x32x8xf32>
    %101 = vector.shape_cast %100 : vector<1x32x8xf32> to vector<32x8xf32>
    %cst_62 = arith.constant dense<0.000000e+00> : vector<8x8xf32>
    %102 = tpu.matmul %30, %101, %cst_62 {dimension_numbers = #tpu.dot_dimension_numbers<[1], [0], [0], [1], [0, 0, 1, 1], [], []>} : vector<8x32xf32>, vector<32x8xf32>, vector<8x8xf32> -> vector<8x8xf32>
    %c2_63 = arith.constant 2 : index
    %c0_64 = arith.constant 0 : index
    %c0_65 = arith.constant 0 : index
    %103 = vector.load %arg8[%c2_63, %c0_64, %c0_65] : memref<4x1x8xf32, #tpu.memory_space<vmem>>, vector<1x1x8xf32>
    %104 = vector.shape_cast %103 : vector<1x1x8xf32> to vector<1x8xf32>
    %105 = vector.broadcast %104 : vector<1x8xf32> to vector<8x8xf32>
    %106 = arith.addf %102, %105 : vector<8x8xf32>
    %cst_66 = arith.constant 0.353553385 : f32
    %107 = vector.broadcast %cst_66 : f32 to vector<8x8xf32>
    %108 = arith.mulf %106, %107 : vector<8x8xf32>
    %c2_67 = arith.constant 2 : index
    %c0_68 = arith.constant 0 : index
    %c0_69 = arith.constant 0 : index
    %109 = vector.load %arg22[%c2_67, %c0_68, %c0_69] : memref<4x16x8xf32, #tpu.memory_space<vmem>>, vector<1x16x8xf32>
    %110 = vector.shape_cast %109 : vector<1x16x8xf32> to vector<16x8xf32>
    %c2_70 = arith.constant 2 : index
    %c0_71 = arith.constant 0 : index
    %c0_72 = arith.constant 0 : index
    %111 = vector.load %arg23[%c2_70, %c0_71, %c0_72] : memref<4x16x8xf32, #tpu.memory_space<vmem>>, vector<1x16x8xf32>
    %112 = vector.shape_cast %111 : vector<1x16x8xf32> to vector<16x8xf32>
    %cst_73 = arith.constant dense<0.000000e+00> : vector<8x16xf32>
    %113 = tpu.matmul %108, %110, %cst_73 {dimension_numbers = #tpu.dot_dimension_numbers<[1], [1], [0], [0], [0, 0, 1, 0], [], []>} : vector<8x8xf32>, vector<16x8xf32>, vector<8x16xf32> -> vector<8x16xf32>
    %114 = vector.broadcast %8 : vector<1x16xf32> to vector<8x16xf32>
    %115 = arith.addf %113, %114 : vector<8x16xf32>
    %cst_74 = arith.constant dense<0xFF800000> : vector<8xf32>
    %116 = vector.multi_reduction <maximumf>, %115, %cst_74 [1] : vector<8x16xf32> to vector<8xf32>
    %117 = vector.shape_cast %116 : vector<8xf32> to vector<8x1xf32>
    %118 = vector.broadcast %117 : vector<8x1xf32> to vector<8x16xf32>
    %119 = arith.subf %115, %118 : vector<8x16xf32>
    %120 = math.exp %119 : vector<8x16xf32>
    %cst_75 = arith.constant dense<0.000000e+00> : vector<8xf32>
    %121 = vector.multi_reduction <add>, %120, %cst_75 [1] : vector<8x16xf32> to vector<8xf32>
    %122 = vector.shape_cast %121 : vector<8xf32> to vector<8x1xf32>
    %123 = tpu.reciprocal %122 {approx = true} : vector<8x1xf32> -> vector<8x1xf32>
    %124 = vector.broadcast %123 : vector<8x1xf32> to vector<8x16xf32>
    %125 = arith.mulf %120, %124 : vector<8x16xf32>
    %cst_76 = arith.constant dense<0.000000e+00> : vector<8x8xf32>
    %126 = tpu.matmul %125, %112, %cst_76 {dimension_numbers = #tpu.dot_dimension_numbers<[1], [0], [0], [1], [0, 0, 1, 1], [], []>} : vector<8x16xf32>, vector<16x8xf32>, vector<8x8xf32> -> vector<8x8xf32>
    %c2_77 = arith.constant 2 : index
    %c0_78 = arith.constant 0 : index
    %c0_79 = arith.constant 0 : index
    %127 = vector.load %arg13[%c2_77, %c0_78, %c0_79] : memref<4x8x32xf32, #tpu.memory_space<vmem>>, vector<1x8x32xf32>
    %128 = vector.shape_cast %127 : vector<1x8x32xf32> to vector<8x32xf32>
    %cst_80 = arith.constant dense<0.000000e+00> : vector<8x32xf32>
    %129 = tpu.matmul %126, %128, %cst_80 {dimension_numbers = #tpu.dot_dimension_numbers<[1], [0], [0], [1], [0, 0, 1, 1], [], []>} : vector<8x8xf32>, vector<8x32xf32>, vector<8x32xf32> -> vector<8x32xf32>
    %130 = arith.addf %99, %129 : vector<8x32xf32>
    %c3 = arith.constant 3 : index
    %c0_81 = arith.constant 0 : index
    %c0_82 = arith.constant 0 : index
    %131 = vector.load %arg7[%c3, %c0_81, %c0_82] : memref<4x32x8xf32, #tpu.memory_space<vmem>>, vector<1x32x8xf32>
    %132 = vector.shape_cast %131 : vector<1x32x8xf32> to vector<32x8xf32>
    %cst_83 = arith.constant dense<0.000000e+00> : vector<8x8xf32>
    %133 = tpu.matmul %30, %132, %cst_83 {dimension_numbers = #tpu.dot_dimension_numbers<[1], [0], [0], [1], [0, 0, 1, 1], [], []>} : vector<8x32xf32>, vector<32x8xf32>, vector<8x8xf32> -> vector<8x8xf32>
    %c3_84 = arith.constant 3 : index
    %c0_85 = arith.constant 0 : index
    %c0_86 = arith.constant 0 : index
    %134 = vector.load %arg8[%c3_84, %c0_85, %c0_86] : memref<4x1x8xf32, #tpu.memory_space<vmem>>, vector<1x1x8xf32>
    %135 = vector.shape_cast %134 : vector<1x1x8xf32> to vector<1x8xf32>
    %136 = vector.broadcast %135 : vector<1x8xf32> to vector<8x8xf32>
    %137 = arith.addf %133, %136 : vector<8x8xf32>
    %cst_87 = arith.constant 0.353553385 : f32
    %138 = vector.broadcast %cst_87 : f32 to vector<8x8xf32>
    %139 = arith.mulf %137, %138 : vector<8x8xf32>
    %c3_88 = arith.constant 3 : index
    %c0_89 = arith.constant 0 : index
    %c0_90 = arith.constant 0 : index
    %140 = vector.load %arg22[%c3_88, %c0_89, %c0_90] : memref<4x16x8xf32, #tpu.memory_space<vmem>>, vector<1x16x8xf32>
    %141 = vector.shape_cast %140 : vector<1x16x8xf32> to vector<16x8xf32>
    %c3_91 = arith.constant 3 : index
    %c0_92 = arith.constant 0 : index
    %c0_93 = arith.constant 0 : index
    %142 = vector.load %arg23[%c3_91, %c0_92, %c0_93] : memref<4x16x8xf32, #tpu.memory_space<vmem>>, vector<1x16x8xf32>
    %143 = vector.shape_cast %142 : vector<1x16x8xf32> to vector<16x8xf32>
    %cst_94 = arith.constant dense<0.000000e+00> : vector<8x16xf32>
    %144 = tpu.matmul %139, %141, %cst_94 {dimension_numbers = #tpu.dot_dimension_numbers<[1], [1], [0], [0], [0, 0, 1, 0], [], []>} : vector<8x8xf32>, vector<16x8xf32>, vector<8x16xf32> -> vector<8x16xf32>
    %145 = vector.broadcast %8 : vector<1x16xf32> to vector<8x16xf32>
    %146 = arith.addf %144, %145 : vector<8x16xf32>
    %cst_95 = arith.constant dense<0xFF800000> : vector<8xf32>
    %147 = vector.multi_reduction <maximumf>, %146, %cst_95 [1] : vector<8x16xf32> to vector<8xf32>
    %148 = vector.shape_cast %147 : vector<8xf32> to vector<8x1xf32>
    %149 = vector.broadcast %148 : vector<8x1xf32> to vector<8x16xf32>
    %150 = arith.subf %146, %149 : vector<8x16xf32>
    %151 = math.exp %150 : vector<8x16xf32>
    %cst_96 = arith.constant dense<0.000000e+00> : vector<8xf32>
    %152 = vector.multi_reduction <add>, %151, %cst_96 [1] : vector<8x16xf32> to vector<8xf32>
    %153 = vector.shape_cast %152 : vector<8xf32> to vector<8x1xf32>
    %154 = tpu.reciprocal %153 {approx = true} : vector<8x1xf32> -> vector<8x1xf32>
    %155 = vector.broadcast %154 : vector<8x1xf32> to vector<8x16xf32>
    %156 = arith.mulf %151, %155 : vector<8x16xf32>
    %cst_97 = arith.constant dense<0.000000e+00> : vector<8x8xf32>
    %157 = tpu.matmul %156, %143, %cst_97 {dimension_numbers = #tpu.dot_dimension_numbers<[1], [0], [0], [1], [0, 0, 1, 1], [], []>} : vector<8x16xf32>, vector<16x8xf32>, vector<8x8xf32> -> vector<8x8xf32>
    %c3_98 = arith.constant 3 : index
    %c0_99 = arith.constant 0 : index
    %c0_100 = arith.constant 0 : index
    %158 = vector.load %arg13[%c3_98, %c0_99, %c0_100] : memref<4x8x32xf32, #tpu.memory_space<vmem>>, vector<1x8x32xf32>
    %159 = vector.shape_cast %158 : vector<1x8x32xf32> to vector<8x32xf32>
    %cst_101 = arith.constant dense<0.000000e+00> : vector<8x32xf32>
    %160 = tpu.matmul %157, %159, %cst_101 {dimension_numbers = #tpu.dot_dimension_numbers<[1], [0], [0], [1], [0, 0, 1, 1], [], []>} : vector<8x8xf32>, vector<8x32xf32>, vector<8x32xf32> -> vector<8x32xf32>
    %161 = arith.addf %130, %160 : vector<8x32xf32>
    %162 = vector.broadcast %36 : vector<1x1xf32> to vector<8x32xf32>
    %163 = arith.mulf %161, %162 : vector<8x32xf32>
    %c0_102 = arith.constant 0 : index
    %c0_103 = arith.constant 0 : index
    %164 = vector.load %arg14[%c0_102, %c0_103] : memref<1x32xf32, #tpu.memory_space<vmem>>, vector<1x32xf32>
    %165 = vector.broadcast %164 : vector<1x32xf32> to vector<8x32xf32>
    %166 = arith.addf %163, %165 : vector<8x32xf32>
    %167 = arith.addf %6, %166 : vector<8x32xf32>
    %c0_104 = arith.constant 0 : index
    %c0_105 = arith.constant 0 : index
    %168 = vector.load %arg15[%c0_104, %c0_105] : memref<1x32xf32, #tpu.memory_space<vmem>>, vector<1x32xf32>
    %c0_106 = arith.constant 0 : index
    %c0_107 = arith.constant 0 : index
    %169 = vector.load %arg16[%c0_106, %c0_107] : memref<1x32xf32, #tpu.memory_space<vmem>>, vector<1x32xf32>
    %cst_108 = arith.constant dense<0.000000e+00> : vector<8xf32>
    %170 = vector.multi_reduction <add>, %167, %cst_108 [1] : vector<8x32xf32> to vector<8xf32>
    %171 = vector.shape_cast %170 : vector<8xf32> to vector<8x1xf32>
    %cst_109 = arith.constant 3.200000e+01 : f32
    %172 = vector.broadcast %cst_109 : f32 to vector<8x1xf32>
    %173 = arith.divf %171, %172 : vector<8x1xf32>
    %174 = vector.broadcast %173 : vector<8x1xf32> to vector<8x32xf32>
    %175 = arith.subf %167, %174 : vector<8x32xf32>
    %176 = arith.mulf %175, %175 : vector<8x32xf32>
    %cst_110 = arith.constant dense<0.000000e+00> : vector<8xf32>
    %177 = vector.multi_reduction <add>, %176, %cst_110 [1] : vector<8x32xf32> to vector<8xf32>
    %178 = vector.shape_cast %177 : vector<8xf32> to vector<8x1xf32>
    %cst_111 = arith.constant 3.200000e+01 : f32
    %179 = vector.broadcast %cst_111 : f32 to vector<8x1xf32>
    %180 = arith.divf %178, %179 : vector<8x1xf32>
    %181 = vector.broadcast %173 : vector<8x1xf32> to vector<8x32xf32>
    %182 = arith.subf %167, %181 : vector<8x32xf32>
    %cst_112 = arith.constant 9.99999996E-13 : f32
    %183 = vector.broadcast %cst_112 : f32 to vector<8x1xf32>
    %184 = arith.addf %180, %183 : vector<8x1xf32>
    %185 = math.rsqrt %184 : vector<8x1xf32>
    %186 = vector.broadcast %185 : vector<8x1xf32> to vector<8x32xf32>
    %187 = arith.mulf %182, %186 : vector<8x32xf32>
    %188 = vector.broadcast %168 : vector<1x32xf32> to vector<8x32xf32>
    %189 = arith.mulf %187, %188 : vector<8x32xf32>
    %190 = vector.broadcast %169 : vector<1x32xf32> to vector<8x32xf32>
    %191 = arith.addf %189, %190 : vector<8x32xf32>
    %c0_113 = arith.constant 0 : index
    %c0_114 = arith.constant 0 : index
    %192 = vector.load %arg17[%c0_113, %c0_114] : memref<32x64xf32, #tpu.memory_space<vmem>>, vector<32x64xf32>
    %cst_115 = arith.constant dense<0.000000e+00> : vector<8x64xf32>
    %193 = tpu.matmul %191, %192, %cst_115 {dimension_numbers = #tpu.dot_dimension_numbers<[1], [0], [0], [1], [0, 0, 1, 1], [], []>} : vector<8x32xf32>, vector<32x64xf32>, vector<8x64xf32> -> vector<8x64xf32>
    %c0_116 = arith.constant 0 : index
    %c0_117 = arith.constant 0 : index
    %194 = vector.load %arg18[%c0_116, %c0_117] : memref<1x64xf32, #tpu.memory_space<vmem>>, vector<1x64xf32>
    %195 = vector.broadcast %194 : vector<1x64xf32> to vector<8x64xf32>
    %196 = arith.addf %193, %195 : vector<8x64xf32>
    %cst_118 = arith.constant 0.000000e+00 : f32
    %197 = vector.broadcast %cst_118 : f32 to vector<8x64xf32>
    %198 = arith.maximumf %196, %197 : vector<8x64xf32>
    %c0_119 = arith.constant 0 : index
    %c0_120 = arith.constant 0 : index
    %199 = vector.load %arg19[%c0_119, %c0_120] : memref<64x32xf32, #tpu.memory_space<vmem>>, vector<64x32xf32>
    %cst_121 = arith.constant dense<0.000000e+00> : vector<8x32xf32>
    %200 = tpu.matmul %198, %199, %cst_121 {dimension_numbers = #tpu.dot_dimension_numbers<[1], [0], [0], [1], [0, 0, 1, 1], [], []>} : vector<8x64xf32>, vector<64x32xf32>, vector<8x32xf32> -> vector<8x32xf32>
    %c0_122 = arith.constant 0 : index
    %c0_123 = arith.constant 0 : index
    %201 = vector.load %arg20[%c0_122, %c0_123] : memref<1x32xf32, #tpu.memory_space<vmem>>, vector<1x32xf32>
    %202 = vector.broadcast %201 : vector<1x32xf32> to vector<8x32xf32>
    %203 = arith.addf %200, %202 : vector<8x32xf32>
    %204 = arith.addf %167, %203 : vector<8x32xf32>
    %c0_124 = arith.constant 0 : index
    %c0_125 = arith.constant 0 : index
    %c0_126 = arith.constant 0 : index
    %205 = vector.load %arg21[%c0_124, %c0_125, %c0_126] : memref<1x8x32xf32, #tpu.memory_space<vmem>>, vector<1x8x32xf32>
    %206 = vector.shape_cast %205 : vector<1x8x32xf32> to vector<8x32xf32>
    %207 = vector.shape_cast %204 : vector<8x32xf32> to vector<1x8x32xf32>
    tpu.vector_store %arg21[%c0_124, %c0_125, %c0_126], %207 {strides = array<i32>} : memref<1x8x32xf32, #tpu.memory_space<vmem>>, vector<1x8x32xf32>,
    return
  }
  func.func @transform_0(%arg0: i32, %arg1: i32) -> (i32, i32, i32) {
    %c0_i32 = arith.constant 0 : i32
    %c0_i32_0 = arith.constant 0 : i32
    return %arg0, %arg1, %c0_i32 : i32, i32, i32
  }
  func.func @transform_1(%arg0: i32, %arg1: i32) -> (i32, i32, i32) {
    %c0_i32 = arith.constant 0 : i32
    %c0_i32_0 = arith.constant 0 : i32
    %c0_i32_1 = arith.constant 0 : i32
    return %arg0, %c0_i32, %c0_i32_0 : i32, i32, i32
  }
  func.func @transform_2(%arg0: i32, %arg1: i32) -> (i32, i32, i32) {
    %c0_i32 = arith.constant 0 : i32
    %c0_i32_0 = arith.constant 0 : i32
    %c0_i32_1 = arith.constant 0 : i32
    return %arg0, %c0_i32, %c0_i32_0 : i32, i32, i32
  }
  func.func @transform_3(%arg0: i32, %arg1: i32) -> (i32, i32) {
    %c0_i32 = arith.constant 0 : i32
    %c0_i32_0 = arith.constant 0 : i32
    %c0_i32_1 = arith.constant 0 : i32
    return %c0_i32, %c0_i32_0 : i32, i32
  }
  func.func @transform_4(%arg0: i32, %arg1: i32) -> (i32, i32) {
    %c0_i32 = arith.constant 0 : i32
    %c0_i32_0 = arith.constant 0 : i32
    %c0_i32_1 = arith.constant 0 : i32
    return %c0_i32, %c0_i32_0 : i32, i32
  }
  func.func @transform_5(%arg0: i32, %arg1: i32) -> (i32, i32, i32) {
    %c0_i32 = arith.constant 0 : i32
    %c0_i32_0 = arith.constant 0 : i32
    %c0_i32_1 = arith.constant 0 : i32
    %c0_i32_2 = arith.constant 0 : i32
    return %c0_i32, %c0_i32_0, %c0_i32_1 : i32, i32, i32
  }
  func.func @transform_6(%arg0: i32, %arg1: i32) -> (i32, i32, i32) {
    %c0_i32 = arith.constant 0 : i32
    %c0_i32_0 = arith.constant 0 : i32
    %c0_i32_1 = arith.constant 0 : i32
    %c0_i32_2 = arith.constant 0 : i32
    return %c0_i32, %c0_i32_0, %c0_i32_1 : i32, i32, i32
  }
  func.func @transform_7(%arg0: i32, %arg1: i32) -> (i32, i32, i32) {
    %c0_i32 = arith.constant 0 : i32
    %c0_i32_0 = arith.constant 0 : i32
    %c0_i32_1 = arith.constant 0 : i32
    %c0_i32_2 = arith.constant 0 : i32
    return %c0_i32, %c0_i32_0, %c0_i32_1 : i32, i32, i32
  }
  func.func @transform_8(%arg0: i32, %arg1: i32) -> (i32, i32, i32) {
    %c0_i32 = arith.constant 0 : i32
    %c0_i32_0 = arith.constant 0 : i32
    %c0_i32_1 = arith.constant 0 : i32
    %c0_i32_2 = arith.constant 0 : i32
    return %c0_i32, %c0_i32_0, %c0_i32_1 : i32, i32, i32
  }
  func.func @transform_9(%arg0: i32, %arg1: i32) -> (i32, i32, i32) {
    %c0_i32 = arith.constant 0 : i32
    %c0_i32_0 = arith.constant 0 : i32
    %c0_i32_1 = arith.constant 0 : i32
    %c0_i32_2 = arith.constant 0 : i32
    return %c0_i32, %c0_i32_0, %c0_i32_1 : i32, i32, i32
  }
  func.func @transform_10(%arg0: i32, %arg1: i32) -> (i32, i32, i32) {
    %c0_i32 = arith.constant 0 : i32
    %c0_i32_0 = arith.constant 0 : i32
    %c0_i32_1 = arith.constant 0 : i32
    %c0_i32_2 = arith.constant 0 : i32
    return %c0_i32, %c0_i32_0, %c0_i32_1 : i32, i32, i32
  }
  func.func @transform_11(%arg0: i32, %arg1: i32) -> (i32, i32, i32) {
    %c0_i32 = arith.constant 0 : i32
    %c0_i32_0 = arith.constant 0 : i32
    %c0_i32_1 = arith.constant 0 : i32
    %c0_i32_2 = arith.constant 0 : i32
    return %c0_i32, %c0_i32_0, %c0_i32_1 : i32, i32, i32
  }
  func.func @transform_12(%arg0: i32, %arg1: i32) -> (i32, i32) {
    %c0_i32 = arith.constant 0 : i32
    %c0_i32_0 = arith.constant 0 : i32
    %c0_i32_1 = arith.constant 0 : i32
    return %c0_i32, %c0_i32_0 : i32, i32
  }
  func.func @transform_13(%arg0: i32, %arg1: i32) -> (i32, i32) {
    %c0_i32 = arith.constant 0 : i32
    %c0_i32_0 = arith.constant 0 : i32
    %c0_i32_1 = arith.constant 0 : i32
    return %c0_i32, %c0_i32_0 : i32, i32
  }
  func.func @transform_14(%arg0: i32, %arg1: i32) -> (i32, i32) {
    %c0_i32 = arith.constant 0 : i32
    %c0_i32_0 = arith.constant 0 : i32
    %c0_i32_1 = arith.constant 0 : i32
    return %c0_i32, %c0_i32_0 : i32, i32
  }
  func.func @transform_15(%arg0: i32, %arg1: i32) -> (i32, i32) {
    %c0_i32 = arith.constant 0 : i32
    %c0_i32_0 = arith.constant 0 : i32
    %c0_i32_1 = arith.constant 0 : i32
    return %c0_i32, %c0_i32_0 : i32, i32
  }
  func.func @transform_16(%arg0: i32, %arg1: i32) -> (i32, i32) {
    %c0_i32 = arith.constant 0 : i32
    %c0_i32_0 = arith.constant 0 : i32
    %c0_i32_1 = arith.constant 0 : i32
    return %c0_i32, %c0_i32_0 : i32, i32
  }
  func.func @transform_17(%arg0: i32, %arg1: i32) -> (i32, i32) {
    %c0_i32 = arith.constant 0 : i32
    %c0_i32_0 = arith.constant 0 : i32
    %c0_i32_1 = arith.constant 0 : i32
    return %c0_i32, %c0_i32_0 : i32, i32
  }
  func.func @transform_18(%arg0: i32, %arg1: i32) -> (i32, i32) {
    %c0_i32 = arith.constant 0 : i32
    %c0_i32_0 = arith.constant 0 : i32
    %c0_i32_1 = arith.constant 0 : i32
    return %c0_i32, %c0_i32_0 : i32, i32
  }
  func.func @transform_19(%arg0: i32, %arg1: i32) -> (i32, i32, i32) {
    %c0_i32 = arith.constant 0 : i32
    %c0_i32_0 = arith.constant 0 : i32
    return %arg0, %arg1, %c0_i32 : i32, i32, i32
  }
}

</mosaic_0001>

<bundles_post_ra>
// kernel: tpu_custom_call.1
= control target key start
LH: loop header
LB: loop body
LE: loop exit
PB: predicated region body
PF: predicated region fallthrough
CT: control target
= control target key end

     0   :  { %s2741_s0 = inlined_call_operand.vmem [shape: f32[2,16,32], index: 0, kind: input, shape index: {}]   ;;  %s2742_s1 = inlined_call_operand.vmem [shape: f32[2,16,32], index: 1, kind: input, shape index: {}]   ;;  %s2743_s2 = inlined_call_operand.vmem [shape: f32[2,1,16], index: 2, kind: input, shape index: {}]   ;;  %s2744_s3 = inlined_call_operand.vmem [shape: f32[1,32], index: 3, kind: input, shape index: {}]   ;;  %s2745_s4 = inlined_call_operand.vmem [shape: f32[1,32], index: 4, kind: input, shape index: {}]   ;;  %s2746_s5 = inlined_call_operand.vmem [shape: f32[4,32,8], index: 5, kind: input, shape index: {}]   ;;  %s2747_s6 = inlined_call_operand.vmem [shape: f32[4,1,8], index: 6, kind: input, shape index: {}]   ;;  %s2748_s7 = inlined_call_operand.vmem [shape: f32[4,32,8], index: 7, kind: input, shape index: {}]   ;;  %s2749_s8 = inlined_call_operand.vmem [shape: f32[4,1,8], index: 8, kind: input, shape index: {}]   ;;  %s2750_s9 = inlined_call_operand.vmem [shape: f32[4,32,8], index: 9, kind: input, shape index: {}]   ;;  %s2751_s10 = inlined_call_operand.vmem [shape: f32[4,1,8], index: 10, kind: input, shape index: {}]   ;;  %s2752_s11 = inlined_call_operand.vmem [shape: f32[4,8,32], index: 11, kind: input, shape index: {}]   ;;  %s2753_s12 = inlined_call_operand.vmem [shape: f32[1,32], index: 12, kind: input, shape index: {}]   ;;  %s2754_s13 = inlined_call_operand.vmem [shape: f32[1,32], index: 13, kind: input, shape index: {}]   ;;  %s2755_s14 = inlined_call_operand.vmem [shape: f32[1,32], index: 14, kind: input, shape index: {}]   ;;  %s2756_s15 = inlined_call_operand.vmem [shape: f32[32,64], index: 15, kind: input, shape index: {}]   ;;  %s2757_s16 = inlined_call_operand.vmem [shape: f32[1,64], index: 16, kind: input, shape index: {}]   ;;  %s2758_s17 = inlined_call_operand.vmem [shape: f32[64,32], index: 17, kind: input, shape index: {}]   ;;  %s2759_s18 = inlined_call_operand.vmem [shape: f32[1,32], index: 18, kind: input, shape index: {}]   ;;  %s2760_s19 = inlined_call_operand.hbm [shape: f32[2,16,32], index: 19, kind: output, shape index: {}]  }
   0x1   :  { %2776 = sst [smem:[#allocation19_spill]] %s2741_s0 }
   0x2   :  { %2777 = sst [smem:[#allocation20_spill]] %s2742_s1 }
   0x3   :  { %2778 = sst [smem:[#allocation21_spill]] %s2743_s2 }
   0x4   :  { %2779 = sst [smem:[#allocation22_spill]] %s2744_s3 }
   0x5   :  { %2780 = sst [smem:[#allocation23_spill]] %s2745_s4 }
   0x6   :  { %2781 = sst [smem:[#allocation24_spill]] %s2754_s13 }
   0x7   :  { %2782 = sst [smem:[#allocation25_spill]] %s2755_s14 }
   0x8   :  { %2783 = sst [smem:[#allocation26_spill]] %s2757_s16 }
   0x9   :  { %2784 = sst [smem:[#allocation27_spill]] %s2759_s18 }
   0xa   :  { %2785 = sst [smem:[#allocation28_spill]] %s2760_s19 }
   0xb   :  { %24 = vsyncpa [#allocation5], 0 }
   0xc   :  { %26 = vsyncpa [#allocation5 + $0x1], 0  ;;  %s2225_s0 = smov 0   ;;  %s2227_s30 = smov 0  }
   0xd   :  { %s2229_s20 = smov 0   ;;  %s2231_s21 = smov 0  }
   0xe   :  { %s2233_s1 = smov 0   ;;  %s2235_s22 = smov 0  }
   0xf   :  { %s2237_s2 = smov 0   ;;  %s2239_s23 = smov 0  }
  0x10 LB: > { %2786 = sst [smem:[#allocation7_spill]] %s2092_s0  ;;  %s1798_s24 = sadd.s32 4294967295, %s2120_s23   ;;  %s2120_s23 = sphi %s2239_s23, %s32_s23   ;;  %s2116_s2 = sphi %s2237_s2, %s2824_s2   ;;  %s2112_s22 = sphi %s2235_s22, %s2823_s22   ;;  %s2108_s1 = sphi %s2233_s1, %s2822_s1   ;;  %s2104_s21 = sphi %s2231_s21, %s2821_s21   ;;  %s2100_s20 = sphi %s2229_s20, %s2820_s20   ;;  %s2096_s30 = sphi %s2227_s30, %s2819_s30   ;;  %s2092_s0 = sphi %s2225_s0, %s2818_s0  }
  0x11   : > { %2787 = sst [smem:[#allocation8_spill]] %s2096_s30  ;;  %s1799_s25 = sadd.s32 4294967294, %s2120_s23  }
  0x12   : > { %2788 = sst [smem:[#allocation9_spill]] %s2100_s20  ;;  %s41_s3 = sadd.s32 1, %s2112_s22 }
  0x13   : > { %2789 = sst [smem:[#allocation10_spill]] %s2108_s1  ;;  %p42_p0 = scmp.ge.s32.totalorder %s41_s3, 2 }
  0x14   : > { %2790 = sst [smem:[#allocation11_spill]] %s2112_s22  ;;  %s44_s26 = sadd.s32 1, %s2116_s2 }
  0x15   : > { %2791 = sst [smem:[#allocation12_spill]] %s2116_s2  ;;  %p479_p1 = scmp.ne.s32.totalorder %s2100_s20, %s2096_s30 }
  0x16   : > { %2792 = sst [smem:[#allocation13_spill]] %s2120_s23  ;;  %p480_p2 = scmp.eq.s32.totalorder %s1798_s24, 3 }
  0x17   : > { %s2826_s3 = smov (%p42_p0, %s41_s3), 0  ;;  %s2828_s26 = smov (!%p42_p0, %s44_s26), %s2116_s2 }
  0x18   : > { %2793 = sst [smem:[#allocation14_spill]] %s2826_s3  ;;  %s465_s27 = ssub.s32 %s2112_s22, %s2826_s3 }
  0x19   : > { %p2276_p3 = por %p480_p2, %p479_p1  ;;  %p46_p4 = scmp.ge.s32.totalorder %s2828_s26, 2 }
  0x1a   : > { %p485_p5 = scmp.ne.s32.totalorder %s2096_s30, %s2092_s0  ;;  %p486_p6 = scmp.eq.s32.totalorder %s1799_s25, 3 }
  0x1b   : > { %s2794_s28 = scalar_select %p2276_p3, 1, 0 }
  0x1c   : > { %p1802_p7 = scmp.ge.s32.totalorder %s2120_s23, 1  ;;  %s2830_s26 = smov (%p46_p4, %s2828_s26), 0 }
  0x1d   : > { %2795 = sst [smem:[#allocation15_spill]] %s2794_s28  ;;  %p2285_p8 = por %p486_p6, %p485_p5 }
  0x1e   : > { %2796 = sst [smem:[#allocation16_spill]] %s2830_s26  ;;  %p577_p9 = scmp.lt.s32.totalorder %s2120_s23, 5 }
  0x1f   : > { %s2797_s29 = scalar_select %p2285_p8, 1, 0 }
  0x20   : > { %s464_s24 = ssub.s32 %s2116_s2, %s2830_s26  ;;  %s469_s19 = sadd.s32 1, %s2100_s20 }
  0x21   : > { %2798 = sst [smem:[#allocation17_spill]] %s2797_s29  ;;  %s466_s18 = sor.u32 %s465_s27, %s464_s24 }
  0x22   : > { %p578_p10 = pnand %p1802_p7, %p577_p9  ;;  %p467_p11 = scmp.eq.s32.totalorder %s466_s18, 0 }
  0x23   : > { %s2773_s25 = sand.u32 (!%p578_p10), 1, %s2096_s30   ;;  %p644_p12 = scmp.lt.s32.totalorder (!%p578_p10), %s2108_s1, 1 }
  0x24   : > { %s2294_s3 = scalar_select %p467_p11, %s2100_s20, %s469_s19  }
  0x25   : > { %581 = sbr.rel (%p578_p10) target bundleno = 2861 (0xb2d), region = 96  ;;  %s2800_s29 = sld [smem:[#allocation22_spill]] (!%p578_p10) }
  0x26   : > { %2799 = sst [smem:[#allocation18_spill]] %s2294_s3  ;;  %s2310_s18 = sshll.u32 (!%p578_p10), %s2773_s25, 3 }
  0x27   : > { %s2801_s4 = sld [smem:[#allocation23_spill]] (!%p578_p10)  ;;  %p646_p13 = scmp.lt.s32.totalorder (!%p578_p10), %s2104_s21, 1 }
  0x28   : > { %s2802_s0 = sld [smem:[#allocation20_spill]] (!%p578_p10)  ;;  %p1808_p0 = scmp.ne.s32.totalorder (!%p578_p10), %s2104_s21, 0 }
  0x29   : > { %s2803_s26 = sld [smem:[#allocation21_spill]] (!%p578_p10) }
  0x2a   : > { %s645_s19 = scalar_select %p644_p12, %s2108_s1, 1 }
  0x2b   : > { %v2301_v0 = vld [vmem:[%s2800_s29] sm:$0x1]  ;;  %s647_s24 = scalar_select %p646_p13, %s2104_s21, 1 }
  0x2c   : > { %s1804_s2 = sshll.u32 %s645_s19, 1  ;;  %s1905_s3 = sshll.u32 %s645_s19, 4 }
  0x2d   : > { %v2306_v1 = vld [vmem:[%s2801_s4] sm:$0x1]  ;;  %s649_s20 = sadd.s32 %s1804_s2, %s647_s24  ;;  %s2804_s30 = sld [smem:[#allocation19_spill]] }
  0x2e   : > { %s656_s22 = scalar_lea.vmem %s2802_s0, %s1905_s3  ;;  %s1805_s29 = sshll.u32 %s649_s20, 3 }
  0x2f   : > { %s2321_s27 = scalar_lea.vmem %s2803_s26, %s645_s19  ;;  %s643_s1 = scalar_lea.vmem [#allocation4], %s2310_s18 }
  0x30   : > { %665 = sbr.rel (%p1808_p0) target bundleno = 483 (0x1e3), region = 100 }
  0x33   : > { %s2326_s13 = scalar_lea.vmem %s2804_s30, %s1805_s29 }
  0x35   : > { %v666_v2 = vld [vmem:[%s656_s22] sm:$0xff]  ;;  %vm668_vm0 = vcmask 261120   ;;  %v667_v4 = vld [vmem:[%s656_s22 + $0x8] sm:$0xff]  ;;  %v2122_v6 = vmov 32.0   ;;  %v733_v23 = vld [vmem:[%s2748_s7 + $0x18] sm:$0xff]  ;;  %vm767_vm8 = vcmask 64512  }
  0x36   : > { %v669_v3 = vsel %vm668_vm0, %v666_v2, 0.0  ;;  %v672_v5 = vsel %vm668_vm0, %v667_v4, 0.0  ;;  %1988 = vrcp.f32 %v2122_v6  ;;  %v773_v24 = vld [vmem:[%s2750_s9 + $0x18] sm:$0xff]  ;;  %756 = vmatpush.msra.mxu0 %v733_v23  ;;  %v732_v27 = vld [vmem:[%s2748_s7 + $0x10] sm:$0xff]  ;;  %v731_v31 = vld [vmem:[%s2748_s7 + $0x8] sm:$0xff] }
  0x37   : > { %670 = vadd.xlane.f32.xlu0 %v669_v3  ;;  %v1816_v25 = vld [vmem:[%s2748_s7 + $0x38] sm:$0xff]  ;;  %790 = vmatpush.msra.mxu1 %v773_v24  ;;  %v772_v28 = vld [vmem:[%s2750_s9 + $0x10] sm:$0xff]  ;;  %v771_v32 = vld [vmem:[%s2750_s9 + $0x8] sm:$0xff] }
  0x38   : > { %v1823_v26 = vld [vmem:[%s2750_s9 + $0x38] sm:$0xff]  ;;  %825 = vmatpush.msra.mxu2 %v1816_v25  ;;  %v1815_v29 = vld [vmem:[%s2748_s7 + $0x30] sm:$0xff]  ;;  %757 = vmatpush.msra.mxu0 %v732_v27  ;;  %v1814_v33 = vld [vmem:[%s2748_s7 + $0x28] sm:$0xff] }
  0x39   : > { %861 = vmatpush.msra.mxu3 %v1823_v26  ;;  %791 = vmatpush.msra.mxu1 %v772_v28  ;;  %v1822_v30 = vld [vmem:[%s2750_s9 + $0x30] sm:$0xff]  ;;  %v1821_v34 = vld [vmem:[%s2750_s9 + $0x28] sm:$0xff]  ;;  %v730_v35 = vld [vmem:[%s2748_s7] sm:$0xff] }
  0x3a   : > { %826 = vmatpush.msra.mxu2 %v1815_v29  ;;  %758 = vmatpush.msra.mxu0 %v731_v31  ;;  %v770_v36 = vld [vmem:[%s2750_s9] sm:$0xff]  ;;  %v1844_v42 = vld [vmem:[%s2748_s7 + $0x78] sm:$0xff]  ;;  %v1843_v44 = vld [vmem:[%s2748_s7 + $0x70] sm:$0xff] }
  0x3b   : > { %862 = vmatpush.msra.mxu3 %v1822_v30  ;;  %792 = vmatpush.msra.mxu1 %v771_v32  ;;  %v1813_v37 = vld [vmem:[%s2748_s7 + $0x20] sm:$0xff]  ;;  %v1851_v43 = vld [vmem:[%s2750_s9 + $0x78] sm:$0xff]  ;;  %v1850_v45 = vld [vmem:[%s2750_s9 + $0x70] sm:$0xff] }
  0x3c   : > { %v1989_v7 = vpop.eup %1988  ;;  %827 = vmatpush.msra.mxu2 %v1814_v33  ;;  %759 = vmatpush.msra.mxu0 %v730_v35  ;;  %v1820_v38 = vld [vmem:[%s2750_s9 + $0x20] sm:$0xff]  ;;  %v1830_v46 = vld [vmem:[%s2748_s7 + $0x58] sm:$0xff]  ;;  %v1842_v48 = vld [vmem:[%s2748_s7 + $0x68] sm:$0xff] }
  0x3d   : > { %v676_v8 = vmul.f32 32.0, %v1989_v7  ;;  %vm680_vm1 = vweird.f32 %v1989_v7  ;;  %863 = vmatpush.msra.mxu3 %v1821_v34  ;;  %793 = vmatpush.msra.mxu1 %v770_v36  ;;  %v1837_v47 = vld [vmem:[%s2750_s9 + $0x58] sm:$0xff]  ;;  %v1849_v49 = vld [vmem:[%s2750_s9 + $0x68] sm:$0xff]  ;;  %v1829_v50 = vld [vmem:[%s2748_s7 + $0x50] sm:$0xff] }
  0x3e   : > { %828 = vmatpush.msra.mxu2 %v1813_v37  ;;  %897 = vmatpush.msrb.mxu0 %v1830_v46  ;;  %v1836_v51 = vld [vmem:[%s2750_s9 + $0x50] sm:$0xff]  ;;  %v1841_v52 = vld [vmem:[%s2748_s7 + $0x60] sm:$0xff]  ;;  %v1828_v55 = vld [vmem:[%s2748_s7 + $0x48] sm:$0xff] }
  0x3f   : > { %673 = vadd.xlane.f32.xlu0 %v672_v5  ;;  %v677_v9 = vsub.f32 1.0, %v676_v8  ;;  %864 = vmatpush.msra.mxu3 %v1820_v38  ;;  %v1848_v53 = vld [vmem:[%s2750_s9 + $0x60] sm:$0xff]  ;;  %v1835_v56 = vld [vmem:[%s2750_s9 + $0x48] sm:$0xff] }
  0x40   : > { %969 = vmatpush.msrb.mxu2 %v1844_v42  ;;  %933 = vmatpush.msrb.mxu1 %v1837_v47  ;;  %v1827_v57 = vld [vmem:[%s2748_s7 + $0x40] sm:$0xff] }
  0x41   : > { %v678_v10 = vmul.f32 %v1989_v7, %v677_v9  ;;  %1005 = vmatpush.msrb.mxu3 %v1851_v43  ;;  %898 = vmatpush.msrb.mxu0 %v1829_v50  ;;  %v1834_v59 = vld [vmem:[%s2750_s9 + $0x40] sm:$0xff] }
  0x42   : > { %970 = vmatpush.msrb.mxu2 %v1843_v44  ;;  %934 = vmatpush.msrb.mxu1 %v1836_v51  ;;  %v1982_v27 = vld [vmem:[%s2749_s8 + $0x1] ss:$0 sm:$0xff]  ;;  %v1984_v37 = vld [vmem:[%s2749_s8 + $0x2] ss:$0 sm:$0xff]  ;;  %v1986_v47 = vld [vmem:[%s2749_s8 + $0x3] ss:$0 sm:$0xff] }
  0x43   : > { %v679_v11 = vadd.f32 %v1989_v7, %v678_v10  ;;  %1006 = vmatpush.msrb.mxu3 %v1850_v45  ;;  %899 = vmatpush.msrb.mxu0 %v1828_v55  ;;  %v726_v10 = vperm.slane %v2306_v1, 0  ;;  %v1983_v28 = vld [vmem:[%s2751_s10 + $0x1] ss:$0 sm:$0xff]  ;;  %v1985_v38 = vld [vmem:[%s2751_s10 + $0x2] ss:$0 sm:$0xff] }
  0x44   : > { %971 = vmatpush.msrb.mxu2 %v1842_v48  ;;  %935 = vmatpush.msrb.mxu1 %v1835_v56  ;;  %v1987_v48 = vld [vmem:[%s2751_s10 + $0x3] ss:$0 sm:$0xff] }
  0x45   : > { %v2332_v12 = vsel %vm680_vm1, %v1989_v7, %v679_v11  ;;  %1007 = vmatpush.msrb.mxu3 %v1849_v49  ;;  %900 = vmatpush.msrb.mxu0 %v1827_v57  ;;  %v721_v7 = vperm.slane %v2301_v0, 0 }
  0x46   : > { %972 = vmatpush.msrb.mxu2 %v1841_v52  ;;  %936 = vmatpush.msrb.mxu1 %v1834_v59 }
  0x47   : > { %1008 = vmatpush.msrb.mxu3 %v1848_v53 }
  0xaa   : > { %v671_v13 = vpop.xlane.xlu0 %670 }
  0xab   : > { %v682_v14 = vmul.f32 %v2332_v12, %v671_v13 }
  0xad   : > { %v2335_v15 = vsub.f32 %v666_v2, %v682_v14 }
  0xaf   : > { %v686_v16 = vmul.f32 %v2335_v15, %v2335_v15 }
  0xb1   : > { %v688_v17 = vsel %vm668_vm0, %v686_v16, 0.0 }
  0xb2   : > { %689 = vadd.xlane.f32.xlu1 %v688_v17  ;;  %v674_v18 = vpop.xlane.xlu0 %673 }
  0xb3   : > { %v683_v19 = vmul.f32 %v2332_v12, %v674_v18 }
  0xb5   : > { %v2341_v20 = vsub.f32 %v667_v4, %v683_v19 }
  0xb7   : > { %v687_v21 = vmul.f32 %v2341_v20, %v2341_v20 }
  0xb9   : > { %v691_v22 = vsel %vm668_vm0, %v687_v21, 0.0 }
  0xba   : > { %692 = vadd.xlane.f32.xlu1 %v691_v22  ;;  %v1981_v22 = vld [vmem:[%s2751_s10] ss:$0 sm:$0xff] }
 0x125   : > { %v690_v39 = vpop.xlane.xlu1 %689 }
 0x126   : > { %v694_v40 = vmul.f32 %v690_v39, %v2332_v12 }
 0x128   : > { %v696_v41 = vadd.f32 1e-12, %v694_v40 }
 0x12a   : > { %1990 = vrsqrt.f32 %v696_v41  ;;  %vm704_vm3 = vweird.f32 %v696_v41 }
 0x12d   : > { %v693_v54 = vpop.xlane.xlu1 %692 }
 0x12e   : > { %v695_v58 = vmul.f32 %v693_v54, %v2332_v12 }
 0x130   : > { %v1991_v60 = vpop.eup %1990  ;;  %v697_v61 = vadd.f32 1e-12, %v695_v58 }
 0x131   : > { %v699_v62 = vmul.f32 %v1991_v60, %v696_v41  ;;  %vm705_vm2 = vweird.f32 %v1991_v60 }
 0x132   : > { %1992 = vrsqrt.f32 %v697_v61  ;;  %vm706_vm4 = vmor %vm704_vm3, %vm705_vm2  ;;  %vm714_vm6 = vweird.f32 %v697_v61 }
 0x133   : > { %v700_v63 = vmul.f32 %v1991_v60, %v699_v62 }
 0x135   : > { %v701_v2 = vmul.f32 0.5, %v700_v63 }
 0x137   : > { %v702_v3 = vsub.f32 1.5, %v701_v2 }
 0x138   : > { %v1993_v4 = vpop.eup %1992 }
 0x139   : > { %v703_v5 = vmul.f32 %v1991_v60, %v702_v3  ;;  %v709_v6 = vmul.f32 %v1993_v4, %v697_v61  ;;  %vm715_vm5 = vweird.f32 %v1993_v4 }
 0x13a   : > { %vm716_vm7 = vmor %vm714_vm6, %vm715_vm5 }
 0x13b   : > { %v707_v8 = vsel %vm706_vm4, %v1991_v60, %v703_v5  ;;  %v710_v9 = vmul.f32 %v1993_v4, %v709_v6 }
 0x13c   : > { %v718_v11 = vmul.f32 %v707_v8, %v2335_v15 }
 0x13d   : > { %v711_v12 = vmul.f32 0.5, %v710_v9 }
 0x13e   : > { %v723_v13 = vmul.f32 %v721_v7, %v718_v11 }
 0x13f   : > { %v712_v14 = vsub.f32 1.5, %v711_v12 }
 0x140   : > { %v728_v16 = vadd.f32 %v726_v10, %v723_v13 }
 0x141   : > { %v713_v17 = vmul.f32 %v1993_v4, %v712_v14 }
 0x142   : > { %1809 = vmatmul.msk.f32.vlgmr.msra.gmra.mxu0 %vm668_vm0, %v728_v16  ;;  %1811 = vmatmul.msk.f32.vlgmr.msra.gmra.mxu1 %vm668_vm0, %v728_v16 }
 0x143   : > { %v717_v18 = vsel %vm716_vm7, %v1993_v4, %v713_v17  ;;  %1818 = vmatmul.msk.f32.vlgmr.msra.gmra.mxu2 %vm668_vm0, %v728_v16  ;;  %1825 = vmatmul.msk.f32.vlgmr.msra.gmra.mxu3 %vm668_vm0, %v728_v16 }
 0x144   : > { %v719_v19 = vmul.f32 %v717_v18, %v2341_v20  ;;  %v1980_v20 = vld [vmem:[%s2749_s8] ss:$0 sm:$0xff] }
 0x146   : > { %v724_v15 = vmul.f32 %v721_v7, %v719_v19 }
 0x148   : > { %v729_v21 = vadd.f32 %v726_v10, %v724_v15 }
 0x14a   : > { %1810 = vmatmul.msk.f32.gmra.mxu0 %vm668_vm0, %v729_v21  ;;  %1812 = vmatmul.msk.f32.gmra.mxu1 %vm668_vm0, %v729_v21 }
 0x14b   : > { %1819 = vmatmul.msk.f32.gmra.mxu2 %vm668_vm0, %v729_v21  ;;  %1826 = vmatmul.msk.f32.gmra.mxu3 %vm668_vm0, %v729_v21 }
 0x152   : > { %1832 = vmatmul.msk.f32.vlgmr.msrb.gmra.mxu0 %vm668_vm0, %v728_v16  ;;  %1839 = vmatmul.msk.f32.vlgmr.msrb.gmra.mxu1 %vm668_vm0, %v728_v16 }
 0x153   : > { %1846 = vmatmul.msk.f32.vlgmr.msrb.gmra.mxu2 %vm668_vm0, %v728_v16  ;;  %1853 = vmatmul.msk.f32.vlgmr.msrb.gmra.mxu3 %vm668_vm0, %v728_v16 }
 0x15a   : > { %1833 = vmatmul.msk.f32.gmra.mxu0 %vm668_vm0, %v729_v21  ;;  %1840 = vmatmul.msk.f32.gmra.mxu1 %vm668_vm0, %v729_v21 }
 0x15b   : > { %1847 = vmatmul.msk.f32.gmra.mxu2 %vm668_vm0, %v729_v21  ;;  %1854 = vmatmul.msk.f32.gmra.mxu3 %vm668_vm0, %v729_v21 }
 0x1bf   : > { %v761_v23 = vpop.f32.mrf.mxu0  ;;  %v795_v24 = vpop.f32.mrf.mxu1 }
 0x1c0   : > { %v762_v25 = vadd.f32 %v1980_v20, %v761_v23  ;;  %v796_v26 = vadd.f32 %v1981_v22, %v795_v24 }
 0x1c2   : > { %768 = vst.msk [vmem:[#allocation2] sm:$0xff] %vm767_vm8, %v762_v25 }
 0x1c3   : > { %801 = vst.msk [vmem:[#allocation3] sm:$0xff] %vm767_vm8, %v796_v26 }
 0x1c6   : > { %v830_v29 = vpop.f32.mrf.mxu2  ;;  %v866_v30 = vpop.f32.mrf.mxu3 }
 0x1c7   : > { %v831_v31 = vadd.f32 %v1982_v27, %v830_v29  ;;  %v867_v32 = vadd.f32 %v1983_v28, %v866_v30  ;;  %v764_v33 = vpop.f32.mrf.mxu0  ;;  %v798_v34 = vpop.f32.mrf.mxu1 }
 0x1c8   : > { %v765_v35 = vadd.f32 %v1980_v20, %v764_v33  ;;  %v799_v36 = vadd.f32 %v1981_v22, %v798_v34 }
 0x1c9   : > { %837 = vst.msk [vmem:[#allocation2 + $0x10] sm:$0xff] %vm767_vm8, %v831_v31 }
 0x1ca   : > { %873 = vst.msk [vmem:[#allocation3 + $0x10] sm:$0xff] %vm767_vm8, %v867_v32 }
 0x1cb   : > { %769 = vst.msk [vmem:[#allocation2 + $0x8] sm:$0xff] %vm767_vm8, %v765_v35 }
 0x1cc   : > { %802 = vst.msk [vmem:[#allocation3 + $0x8] sm:$0xff] %vm767_vm8, %v799_v36 }
 0x1ce   : > { %v833_v39 = vpop.f32.mrf.mxu2  ;;  %v869_v40 = vpop.f32.mrf.mxu3 }
 0x1cf   : > { %v834_v41 = vadd.f32 %v1982_v27, %v833_v39  ;;  %v870_v42 = vadd.f32 %v1983_v28, %v869_v40  ;;  %v902_v43 = vpop.f32.mrf.mxu0  ;;  %v938_v44 = vpop.f32.mrf.mxu1 }
 0x1d0   : > { %v903_v45 = vadd.f32 %v1984_v37, %v902_v43  ;;  %v939_v46 = vadd.f32 %v1985_v38, %v938_v44 }
 0x1d1   : > { %838 = vst.msk [vmem:[#allocation2 + $0x18] sm:$0xff] %vm767_vm8, %v834_v41 }
 0x1d2   : > { %874 = vst.msk [vmem:[#allocation3 + $0x18] sm:$0xff] %vm767_vm8, %v870_v42 }
 0x1d3   : > { %909 = vst.msk [vmem:[#allocation2 + $0x20] sm:$0xff] %vm767_vm8, %v903_v45 }
 0x1d4   : > { %945 = vst.msk [vmem:[#allocation3 + $0x20] sm:$0xff] %vm767_vm8, %v939_v46 }
 0x1d6   : > { %v974_v49 = vpop.f32.mrf.mxu2  ;;  %v1010_v50 = vpop.f32.mrf.mxu3 }
 0x1d7   : > { %v975_v51 = vadd.f32 %v1986_v47, %v974_v49  ;;  %v1011_v52 = vadd.f32 %v1987_v48, %v1010_v50  ;;  %v905_v53 = vpop.f32.mrf.mxu0  ;;  %v941_v54 = vpop.f32.mrf.mxu1 }
 0x1d8   : > { %v906_v55 = vadd.f32 %v1984_v37, %v905_v53  ;;  %v942_v56 = vadd.f32 %v1985_v38, %v941_v54 }
 0x1d9   : > { %981 = vst.msk [vmem:[#allocation2 + $0x30] sm:$0xff] %vm767_vm8, %v975_v51 }
 0x1da   : > { %1017 = vst.msk [vmem:[#allocation3 + $0x30] sm:$0xff] %vm767_vm8, %v1011_v52 }
 0x1db   : > { %910 = vst.msk [vmem:[#allocation2 + $0x28] sm:$0xff] %vm767_vm8, %v906_v55 }
 0x1dc   : > { %946 = vst.msk [vmem:[#allocation3 + $0x28] sm:$0xff] %vm767_vm8, %v942_v56 }
 0x1de   : > { %v977_v57 = vpop.f32.mrf.mxu2  ;;  %v1013_v58 = vpop.f32.mrf.mxu3 }
 0x1df   : > { %v978_v59 = vadd.f32 %v1986_v47, %v977_v57  ;;  %v1014_v60 = vadd.f32 %v1987_v48, %v1013_v58 }
 0x1e1   : > { %982 = vst.msk [vmem:[#allocation2 + $0x38] sm:$0xff] %vm767_vm8, %v978_v59 }
 0x1e2   : > { %1018 = vst.msk [vmem:[#allocation3 + $0x38] sm:$0xff] %vm767_vm8, %v1014_v60 }
 0x1e3 PF: > { %v2505_v61 = vld [vmem:[%s2326_s13] sm:$0xff]  ;;  %vm1021_vm9 = vcmask 261120   ;;  %v2123_v63 = vmov 32.0   ;;  %v1069_v13 = vld [vmem:[%s2746_s5 + $0x18] sm:$0xff]  ;;  %v1068_v16 = vld [vmem:[%s2746_s5 + $0x10] sm:$0xff]  ;;  %vm1105_vm11 = vcmask 64512  }
 0x1e4   : > { %v1022_v62 = vsel %vm1021_vm9, %v2505_v61, 0.0  ;;  %2004 = vrcp.f32 %v2123_v63  ;;  %v1864_v14 = vld [vmem:[%s2746_s5 + $0x38] sm:$0xff]  ;;  %1089 = vmatpush.msra.mxu1 %v1069_v13  ;;  %v1863_v17 = vld [vmem:[%s2746_s5 + $0x30] sm:$0xff]  ;;  %v1067_v18 = vld [vmem:[%s2746_s5 + $0x8] sm:$0xff]  ;;  %v1052_v31 = vperm.slane %v2301_v0, 0  ;;  %v1056_v34 = vperm.slane %v2306_v1, 0 }
 0x1e5   : > { %1023 = vadd.xlane.f32.xlu0 %v1022_v62  ;;  %1193 = vmatpush.msra.mxu3 %v1864_v14  ;;  %v1862_v19 = vld [vmem:[%s2746_s5 + $0x28] sm:$0xff]  ;;  %v1066_v15 = vld [vmem:[%s2746_s5] sm:$0xff]  ;;  %vm1135_vm15 = vcmask 130048   ;;  %v1204_v51 = vld [vmem:[#allocation2 + $0x18] sm:$0xff]  ;;  %vm1059_vm0 = vcmask 122880   ;;  %s2805_s13 = sld [smem:[#allocation24_spill]] }
 0x1e6   : > { %1090 = vmatpush.msra.mxu1 %v1068_v16  ;;  %v1861_v21 = vld [vmem:[%s2746_s5 + $0x20] sm:$0xff]  ;;  %v1099_v20 = vld [vmem:[#allocation2 + $0x8] sm:$0xff]  ;;  %v1203_v52 = vld [vmem:[#allocation2 + $0x10] sm:$0xff]  ;;  %s2806_s16 = sld [smem:[#allocation25_spill]]  ;;  %vm1655_vm5 = vcmask 523264   ;;  %s1696_s25 = sshll.u32 %s643_s1, 4  ;;  %s1697_s25 = int_to_ptr.vmem [resolvable:$true] %s1696_s25 }
 0x1e7   : > { %1194 = vmatpush.msra.mxu3 %v1863_v17  ;;  %v1098_v37 = vld [vmem:[#allocation2] sm:$0xff]  ;;  %v1101_v49 = vld [vmem:[#allocation3 + $0x8] sm:$0xff]  ;;  %v1877_v57 = vld [vmem:[%s2746_s5 + $0x58] sm:$0xff]  ;;  %s2807_s30 = sld [smem:[#allocation10_spill]] }
 0x1e8   : > { %1091 = vmatpush.msra.mxu1 %v1067_v18  ;;  %v1994_v38 = vld [vmem:[%s2747_s6] ss:$0 sm:$0xff]  ;;  %1164 = vmatpush.msra.mxu2 %v1101_v49  ;;  %v1995_v55 = vld [vmem:[%s2747_s6 + $0x1] ss:$0 sm:$0xff]  ;;  %v1876_v59 = vld [vmem:[%s2746_s5 + $0x50] sm:$0xff]  ;;  %s2808_s0 = sld [smem:[#allocation26_spill]] }
 0x1e9   : > { %1195 = vmatpush.msra.mxu3 %v1862_v19  ;;  %v2550_v41 = vld [vmem:[%s2321_s27] ss:$0 sm:$0xff]  ;;  %v1875_v62 = vld [vmem:[%s2746_s5 + $0x48] sm:$0xff]  ;;  %v1207_v19 = vld [vmem:[#allocation3 + $0x18] sm:$0xff]  ;;  %s2810_s14 = sld [smem:[#allocation27_spill]] }
 0x1ea   : > { %v2005_v2 = vpop.eup %2004  ;;  %1092 = vmatpush.msra.mxu1 %v1066_v15  ;;  %v1100_v50 = vld [vmem:[#allocation3] sm:$0xff]  ;;  %v1206_v15 = vld [vmem:[#allocation3 + $0x10] sm:$0xff]  ;;  %1265 = vmatpush.msra.mxu0 %v1207_v19  ;;  %s2812_s23 = sld [smem:[#allocation28_spill]] }
 0x1eb   : > { %v1026_v3 = vmul.f32 32.0, %v2005_v2  ;;  %vm1030_vm10 = vweird.f32 %v2005_v2  ;;  %1196 = vmatpush.msra.mxu3 %v1861_v21  ;;  %1165 = vmatpush.msra.mxu2 %v1100_v50  ;;  %v1874_v63 = vld [vmem:[%s2746_s5 + $0x40] sm:$0xff]  ;;  %v1352_v21 = vld [vmem:[#allocation2 + $0x28] sm:$0xff] }
 0x1ec   : > { %1857 = vmatpush.xpose.msk.msrb.mxu1 %vm1105_vm11, %v1099_v20  ;;  %1266 = vmatpush.msra.mxu0 %v1206_v15  ;;  %v1351_v20 = vld [vmem:[#allocation2 + $0x20] sm:$0xff] }
 0x1ed   : > { %v1027_v4 = vsub.f32 1.0, %v1026_v3  ;;  %1867 = vmatpush.xpose.msk.msrb.mxu2 %vm1105_vm11, %v1204_v51  ;;  %v1889_v3 = vld [vmem:[%s2746_s5 + $0x78] sm:$0xff]  ;;  %v1999_v19 = vld [vmem:[%s2753_s12] ss:$0 sm:$0xff]  ;;  %s1901_s22 = sshll.u32 %s2807_s30, 1 }
 0x1ee   : > { %1880 = vmatpush.xpose.msk.msrb.mxu0 %vm1105_vm11, %v1352_v21  ;;  %s1692_s29 = sadd.s32 %s2104_s21, %s1901_s22 }
 0x1ef   : > { %v1028_v5 = vmul.f32 %v2005_v2, %v1027_v4  ;;  %v1888_v4 = vld [vmem:[%s2746_s5 + $0x70] sm:$0xff]  ;;  %s1902_s26 = sshll.u32 %s1692_s29, 3 }
 0x1f0   : > { %1858 = vmatpush.xpose.msk.msrb.mxu1 %vm1105_vm11, %v1098_v37  ;;  %s2813_s3 = smov %s2812_s23  ;;  %s1694_s28 = scalar_lea.hbm %s2812_s23, %s1902_s26 }
 0x1f1   : > { %v1029_v6 = vadd.f32 %v2005_v2, %v1028_v5  ;;  %1868 = vmatpush.xpose.msk.msrb.mxu2 %vm1105_vm11, %v1203_v52  ;;  %v1887_v5 = vld [vmem:[%s2746_s5 + $0x68] sm:$0xff]  ;;  %v1354_v52 = vld [vmem:[#allocation3 + $0x20] sm:$0xff]  ;;  %s1698_s19 = sshll.u32 %s1694_s28, 4  ;;  %s2046_s26 = scalar_lea.hbm %s2813_s3, 32  ;;  %s1699_s19 = int_to_ptr.hbm [resolvable:$true] %s1698_s19 }
 0x1f2   : > { %1881 = vmatpush.xpose.msk.msrb.mxu0 %vm1105_vm11, %v1351_v20  ;;  %s2040_s24 = sshra.s32 %s1699_s19, 4  ;;  %s2041_s24 = int_to_ptr.hbm [resolvable:$true] %s2040_s24 }
 0x1f3   : > { %v2509_v7 = vsel %vm1030_vm10, %v2005_v2, %v1029_v6  ;;  %v1886_v6 = vld [vmem:[%s2746_s5 + $0x60] sm:$0xff]  ;;  %p2047_p5 = scmp.lt.s32.totalorder %s2041_s24, %s2813_s3 }
 0x258   : > { %v1024_v8 = vpop.xlane.xlu0 %1023 }
 0x259   : > { %v1032_v9 = vmul.f32 %v2509_v7, %v1024_v8  ;;  %v1170_v8 = vld [vmem:[%s2752_s11] sm:$0xff] }
 0x25a   : > { %1314 = vmatpush.msrb.mxu3 %v1170_v8 }
 0x25b   : > { %v1033_v10 = vsub.f32 %v2505_v61, %v1032_v9 }
 0x25d   : > { %v1034_v11 = vmul.f32 %v1033_v10, %v1033_v10 }
 0x25f   : > { %v1035_v12 = vsel %vm1021_vm9, %v1034_v11, 0.0 }
 0x260   : > { %1036 = vadd.xlane.f32.xlu0 %v1035_v12 }
 0x2d3   : > { %v1037_v22 = vpop.xlane.xlu0 %1036 }
 0x2d4   : > { %v1038_v23 = vmul.f32 %v1037_v22, %v2509_v7 }
 0x2d6   : > { %v1039_v24 = vadd.f32 1e-12, %v1038_v23 }
 0x2d8   : > { %2006 = vrsqrt.f32 %v1039_v24  ;;  %vm1046_vm13 = vweird.f32 %v1039_v24 }
 0x2de   : > { %v2007_v25 = vpop.eup %2006 }
 0x2df   : > { %v1041_v26 = vmul.f32 %v2007_v25, %v1039_v24  ;;  %vm1047_vm12 = vweird.f32 %v2007_v25 }
 0x2e0   : > { %vm1048_vm14 = vmor %vm1046_vm13, %vm1047_vm12 }
 0x2e1   : > { %v1042_v27 = vmul.f32 %v2007_v25, %v1041_v26 }
 0x2e3   : > { %v1043_v28 = vmul.f32 0.5, %v1042_v27  ;;  %v1478_v27 = vld [vmem:[#allocation2 + $0x38] sm:$0xff] }
 0x2e5   : > { %v1044_v29 = vsub.f32 1.5, %v1043_v28 }
 0x2e7   : > { %v1045_v30 = vmul.f32 %v2007_v25, %v1044_v29  ;;  %v1477_v29 = vld [vmem:[#allocation2 + $0x30] sm:$0xff] }
 0x2e9   : > { %v1049_v32 = vsel %vm1048_vm14, %v2007_v25, %v1045_v30  ;;  %v1997_v25 = vld [vmem:[%s2747_s6 + $0x2] ss:$0 sm:$0xff] }
 0x2ea   : > { %v1050_v33 = vmul.f32 %v1049_v32, %v1033_v10 }
 0x2ec   : > { %v1054_v35 = vmul.f32 %v1052_v31, %v1050_v33  ;;  %v1998_v31 = vld [vmem:[%s2747_s6 + $0x3] ss:$0 sm:$0xff] }
 0x2ee   : > { %v1058_v36 = vadd.f32 %v1056_v34, %v1054_v35  ;;  %v1871_v35 = vld [vmem:[%s2752_s11 + $0x8] sm:$0xff] }
 0x2f0   : > { %1856 = vmatmul.msk.f32.vlgmr.msra.gmra.mxu1 %vm1021_vm9, %v1058_v36  ;;  %1866 = vmatmul.msk.f32.vlgmr.msra.gmra.mxu3 %vm1021_vm9, %v1058_v36 }
 0x2f1   : > { %1291 = vmatpush.msra.mxu1 %v1871_v35 }
 0x36d   : > { %v1094_v39 = vpop.f32.mrf.mxu1 }
 0x36e   : > { %v1095_v40 = vadd.f32 %v1994_v38, %v1094_v39 }
 0x370   : > { %v1097_v0 = vmul.f32 0.35355338, %v1095_v40 }
 0x372   : > { %1859 = vmatmul.msk.f32.vlgmr.msrb.gmra.mxu1 %vm1105_vm11, %v1097_v0 }
 0x373   : > { %v1198_v58 = vpop.f32.mrf.mxu3 }
 0x374   : > { %v1199_v60 = vadd.f32 %v1995_v55, %v1198_v58  ;;  %v1884_v55 = vld [vmem:[%s2752_s11 + $0x10] sm:$0xff] }
 0x375   : > { %1439 = vmatpush.msra.mxu3 %v1884_v55  ;;  %v2003_v55 = vld [vmem:[%s2810_s14] ss:$0 sm:$0xff] }
 0x376   : > { %v1201_v2 = vmul.f32 0.35355338, %v1199_v60 }
 0x3ef   : > { %v1132_v1 = vpop.f32.mrf.mxu1 }
 0x3f0   : > { %v1133_v42 = vadd.f32 %v2550_v41, %v1132_v1 }
 0x3f2   : > { %v1136_v43 = vsel %vm1135_vm15, %v1133_v42, -inf }
 0x3f3   : > { %1137 = vmax.xlane.f32.xlu1 %v1136_v43 }
 0x466   : > { %v1138_v44 = vpop.xlane.xlu1 %1137 }
 0x467   : > { %v1139_v45 = vsub.f32 %v1133_v42, %v1138_v44 }
 0x469   : > { %v1140_v46 = vmul.f32 1.442695, %v1139_v45 }
 0x46b   : > { %2008 = vpow2.f32 %v1140_v46 }
 0x471   : > { %v2009_v47 = vpop.eup %2008 }
 0x472   : > { %v1142_v48 = vsel %vm1135_vm15, %v2009_v47, 0.0 }
 0x473   : > { %1143 = vadd.xlane.f32.xlu1 %v1142_v48 }
 0x4e6   : > { %v1144_v53 = vpop.xlane.xlu1 %1143 }
 0x4e7   : > { %2010 = vrcp.f32 %v1144_v53  ;;  %v1481_v53 = vld [vmem:[#allocation3 + $0x38] sm:$0xff] }
 0x4ed   : > { %v2011_v54 = vpop.eup %2010 }
 0x4ee   : > { %v1146_v56 = vmul.f32 %v2011_v54, %v2009_v47  ;;  %v1480_v54 = vld [vmem:[#allocation3 + $0x30] sm:$0xff] }
 0x4f0   : > { %1860 = vmatmul.msk.f32.vlgmr.msra.gmra.mxu2 %vm1135_vm15, %v1146_v56 }
 0x4f1   : > { %1341 = vmatpush.msra.mxu2 %v1877_v57 }
 0x4f3   : > { %1342 = vmatpush.msra.mxu2 %v1876_v59 }
 0x4f5   : > { %1343 = vmatpush.msra.mxu2 %v1875_v62 }
 0x4f7   : > { %1344 = vmatpush.msra.mxu2 %v1874_v63  ;;  %v1896_v63 = vld [vmem:[%s2752_s11 + $0x18] sm:$0xff] }
 0x4f8   : > { %1869 = vmatmul.msk.f32.vlgmr.msrb.gmra.mxu2 %vm1105_vm11, %v1201_v2  ;;  %v1020_v2 = vld [vmem:[%s2321_s27] sm:$0x1]  ;;  %s2809_s27 = sld [smem:[#allocation8_spill]] }
 0x4f9   : > { %1467 = vmatpush.msrb.mxu2 %v1889_v3  ;;  %v1060_v3 = vsel %vm1059_vm0, %v1020_v2, -inf }
 0x4fb   : > { %1468 = vmatpush.msrb.mxu2 %v1888_v4 }
 0x4fd   : > { %1469 = vmatpush.msrb.mxu2 %v1887_v5 }
 0x4fe   : > { %s2814_s21 = sand.u32 1, %s2809_s27  }
 0x4ff   : > { %1470 = vmatpush.msrb.mxu2 %v1886_v6  ;;  %s1682_s30 = scalar_lea.sflag [#allocation5], %s2814_s21 }
 0x500   : > { %1879 = vmatmul.msk.f32.vlgmr.msra.gmra.mxu2 %vm1021_vm9, %v1058_v36 }
 0x508   : > { %1891 = vmatmul.msk.f32.vlgmr.msrb.gmra.mxu2 %vm1021_vm9, %v1058_v36 }
 0x573   : > { %v1167_v9 = vpop.f32.mrf.mxu2 }
 0x574   : > { %1873 = vmatmul.msk.f32.vlgmr.msrb.gmra.mxu3 %vm1105_vm11, %v1167_v9 }
 0x575   : > { %1565 = vmatpush.msrb.mxu3 %v1896_v63 }
 0x57b   : > { %v1234_v10 = vpop.f32.mrf.mxu2 }
 0x57c   : > { %v1235_v11 = vadd.f32 %v2550_v41, %v1234_v10 }
 0x57e   : > { %v1237_v12 = vsel %vm1135_vm15, %v1235_v11, -inf }
 0x57f   : > { %1238 = vmax.xlane.f32.xlu2 %v1237_v12 }
 0x583   : > { %v1346_v24 = vpop.f32.mrf.mxu2 }
 0x584   : > { %v1347_v28 = vadd.f32 %v1997_v25, %v1346_v24 }
 0x586   : > { %v1349_v30 = vmul.f32 0.35355338, %v1347_v28  ;;  %v1614_v28 = vld [vmem:[%s2756_s15 + $0x18] sm:$0xff] }
 0x587   : > { %1634 = vmatpush.msra.mxu2 %v1614_v28 }
 0x58b   : > { %v1472_v32 = vpop.f32.mrf.mxu2 }
 0x58c   : > { %v1473_v33 = vadd.f32 %v1998_v31, %v1472_v32  ;;  %v1650_v31 = vld [vmem:[%s2758_s17 + $0x38] sm:$0xff]  ;;  %v1649_v32 = vld [vmem:[%s2758_s17 + $0x30] sm:$0xff] }
 0x58e   : > { %v1475_v34 = vmul.f32 0.35355338, %v1473_v33  ;;  %v1648_v33 = vld [vmem:[%s2758_s17 + $0x28] sm:$0xff] }
 0x5f2   : > { %v1239_v13 = vpop.xlane.xlu2 %1238 }
 0x5f3   : > { %v1240_v14 = vsub.f32 %v1235_v11, %v1239_v13  ;;  %v2124_v11 = vmov 0.0  }
 0x5f5   : > { %v1241_v16 = vmul.f32 1.442695, %v1240_v14 }
 0x5f7   : > { %2012 = vpow2.f32 %v1241_v16  ;;  %v1316_v8 = vpop.f32.mrf.mxu3 }
 0x5fd   : > { %v2013_v17 = vpop.eup %2012 }
 0x5fe   : > { %v1243_v18 = vsel %vm1135_vm15, %v2013_v17, 0.0 }
 0x5ff   : > { %1244 = vadd.xlane.f32.xlu2 %v1243_v18 }
 0x672   : > { %v1245_v22 = vpop.xlane.xlu2 %1244 }
 0x673   : > { %2014 = vrcp.f32 %v1245_v22 }
 0x679   : > { %v2015_v23 = vpop.eup %2014 }
 0x67a   : > { %v1247_v26 = vmul.f32 %v2015_v23, %v2013_v17 }
 0x67c   : > { %1870 = vmatmul.msk.f32.vlgmr.msra.gmra.mxu0 %vm1135_vm15, %v1247_v26 }
 0x67d   : > { %1892 = vmatpush.xpose.msk.msra.mxu0 %vm1105_vm11, %v1478_v27 }
 0x681   : > { %1893 = vmatpush.xpose.msk.msra.mxu0 %vm1105_vm11, %v1477_v29  ;;  %v1612_v29 = vld [vmem:[%s2756_s15 + $0x8] sm:$0xff] }
 0x684   : > { %1882 = vmatmul.msk.f32.vlgmr.msrb.gmra.mxu0 %vm1105_vm11, %v1349_v30  ;;  %v1611_v30 = vld [vmem:[%s2756_s15] sm:$0xff] }
 0x685   : > { %1667 = vmatpush.msrb.mxu0 %v1650_v31 }
 0x687   : > { %1668 = vmatpush.msrb.mxu0 %v1649_v32 }
 0x689   : > { %1669 = vmatpush.msrb.mxu0 %v1648_v33 }
 0x68c   : > { %1894 = vmatmul.msk.f32.vlgmr.msra.gmra.mxu0 %vm1105_vm11, %v1475_v34 }
 0x6f9   : > { %v1268_v36 = vpop.f32.mrf.mxu0 }
 0x6fa   : > { %1872 = vmatmul.msk.f32.vlgmr.msra.gmra.mxu1 %vm1105_vm11, %v1268_v36  ;;  %v1647_v36 = vld [vmem:[%s2758_s17 + $0x20] sm:$0xff] }
 0x6fb   : > { %1670 = vmatpush.msrb.mxu0 %v1647_v36 }
 0x701   : > { %v1382_v37 = vpop.f32.mrf.mxu0 }
 0x702   : > { %v1383_v38 = vadd.f32 %v2550_v41, %v1382_v37 }
 0x704   : > { %v1385_v39 = vsel %vm1135_vm15, %v1383_v38, -inf }
 0x705   : > { %1386 = vmax.xlane.f32.xlu0 %v1385_v39 }
 0x709   : > { %v1508_v40 = vpop.f32.mrf.mxu0 }
 0x70a   : > { %v1509_v0 = vadd.f32 %v2550_v41, %v1508_v40  ;;  %v1355_v41 = vld [vmem:[#allocation3 + $0x28] sm:$0xff] }
 0x70b   : > { %1413 = vmatpush.msrb.mxu1 %v1355_v41  ;;  %v2002_v41 = vld [vmem:[%s2808_s0] ss:$0 sm:$0xff]  ;;  %s2042_s0 = scalar_lea.hbm %s2041_s24, 8 }
 0x70c   : > { %v1511_v1 = vsel %vm1135_vm15, %v1509_v0, -inf  ;;  %p2043_p1 = scmp.ne.s32.totalorder %s2041_s24, %s2042_s0  ;;  %p2048_p6 = scmp.lt.s32.totalorder %s2046_s26, %s2042_s0 }
 0x70d   : > { %1512 = vmax.xlane.f32.xlu1 %v1511_v1  ;;  %1414 = vmatpush.msrb.mxu1 %v1354_v52 }
 0x70e   : > { %p2044_p2 = pnand %p2043_p1, %p2276_p3  ;;  %p2049_p7 = por %p2048_p6, %p2047_p5 }
 0x70f   : > { %1539 = vmatpush.msra.mxu1 %v1481_v53 }
 0x710   : > { %p2045_p4 = pneg %p2044_p2 }
 0x711   : > { %1540 = vmatpush.msra.mxu1 %v1480_v54 }
 0x712   : > { %p2050_p9 = pnand %p2049_p7, %p2045_p4 }
 0x715   : > { %1061 = vmax.xlane.f32.xlu1 %v1060_v3 }
 0x777   : > { %v1293_v4 = vpop.f32.mrf.mxu1 }
 0x778   : > { %v1387_v42 = vpop.xlane.xlu0 %1386  ;;  %v1317_v13 = vadd.f32 %v1316_v8, %v1293_v4 }
 0x779   : > { %v1388_v43 = vsub.f32 %v1383_v38, %v1387_v42  ;;  %v1646_v38 = vld [vmem:[%s2758_s17 + $0x18] sm:$0xff] }
 0x77a   : > { %1671 = vmatpush.msrb.mxu0 %v1646_v38 }
 0x77b   : > { %v1389_v44 = vmul.f32 1.442695, %v1388_v43  ;;  %v2000_v43 = vld [vmem:[%s2805_s13] ss:$0 sm:$0xff] }
 0x77d   : > { %2016 = vpow2.f32 %v1389_v44 }
 0x780   : > { %v1513_v45 = vpop.xlane.xlu1 %1512 }
 0x781   : > { %v1514_v46 = vsub.f32 %v1509_v0, %v1513_v45 }
 0x783   : > { %v2017_v47 = vpop.eup %2016  ;;  %v1515_v48 = vmul.f32 1.442695, %v1514_v46  ;;  %v2001_v46 = vld [vmem:[%s2806_s16] ss:$0 sm:$0xff] }
 0x784   : > { %v1391_v49 = vsel %vm1135_vm15, %v2017_v47, 0.0 }
 0x785   : > { %2018 = vpow2.f32 %v1515_v48  ;;  %1392 = vadd.xlane.f32.xlu2 %v1391_v49  ;;  %v1645_v49 = vld [vmem:[%s2758_s17 + $0x10] sm:$0xff] }
 0x786   : > { %1672 = vmatpush.msrb.mxu0 %v1645_v49 }
 0x788   : > { %v1062_v9 = vpop.xlane.xlu1 %1061 }
 0x789   : > { %vm1063_vm1 = vcmp.gt.f32.partialorder %v1062_v9, -1.0 }
 0x78a   : > { %v1855_v12 = vsel %vm1063_vm1, 1.0, %v2124_v11 }
 0x78b   : > { %v2019_v50 = vpop.eup %2018  ;;  %v1571_v16 = vperm.slane %v1855_v12, 0 }
 0x78c   : > { %v1517_v51 = vsel %vm1135_vm15, %v2019_v50, 0.0 }
 0x78d   : > { %1518 = vadd.xlane.f32.xlu0 %v1517_v51  ;;  %v1643_v51 = vld [vmem:[%s2758_s17] sm:$0xff] }
 0x7f8   : > { %v1393_v56 = vpop.xlane.xlu2 %1392 }
 0x7f9   : > { %2020 = vrcp.f32 %v1393_v56 }
 0x7ff   : > { %v2021_v57 = vpop.eup %2020 }
 0x800   : > { %v1395_v58 = vmul.f32 %v2021_v57, %v2017_v47  ;;  %v1519_v59 = vpop.xlane.xlu0 %1518 }
 0x801   : > { %2022 = vrcp.f32 %v1519_v59 }
 0x802   : > { %1883 = vmatmul.msk.f32.vlgmr.msrb.gmra.mxu1 %vm1135_vm15, %v1395_v58 }
 0x807   : > { %v2023_v60 = vpop.eup %2022 }
 0x808   : > { %v1521_v62 = vmul.f32 %v2023_v60, %v2019_v50  ;;  %v1644_v50 = vld [vmem:[%s2758_s17 + $0x8] sm:$0xff] }
 0x809   : > { %1673 = vmatpush.msrb.mxu0 %v1644_v50 }
 0x80a   : > { %1895 = vmatmul.msk.f32.vlgmr.msra.gmra.mxu1 %vm1135_vm15, %v1521_v62 }
 0x80b   : > { %1674 = vmatpush.msrb.mxu0 %v1643_v51 }
 0x87f   : > { %v1416_v5 = vpop.f32.mrf.mxu1 }
 0x880   : > { %1885 = vmatmul.msk.f32.vlgmr.msra.gmra.mxu3 %vm1105_vm11, %v1416_v5 }
 0x887   : > { %v1542_v6 = vpop.f32.mrf.mxu1 }
 0x888   : > { %1897 = vmatmul.msk.f32.vlgmr.msrb.gmra.mxu3 %vm1105_vm11, %v1542_v6 }
 0x903   : > { %v1441_v10 = vpop.f32.mrf.mxu3 }
 0x904   : > { %v1444_v14 = vadd.f32 %v1441_v10, %v1317_v13 }
 0x90b   : > { %v1567_v17 = vpop.f32.mrf.mxu3 }
 0x90c   : > { %v1570_v18 = vadd.f32 %v1567_v17, %v1444_v14 }
 0x90e   : > { %v1572_v15 = vmul.f32 %v1571_v16, %v1570_v18 }
 0x910   : > { %v1577_v21 = vadd.f32 %v1999_v19, %v1572_v15 }
 0x912   : > { %v2633_v20 = vadd.f32 %v1577_v21, %v2505_v61  ;;  %v1613_v61 = vld [vmem:[%s2756_s15 + $0x10] sm:$0xff] }
 0x913   : > { %1635 = vmatpush.msra.mxu2 %v1613_v61 }
 0x914   : > { %v1581_v22 = vsel %vm1021_vm9, %v2633_v20, 0.0 }
 0x915   : > { %1582 = vadd.xlane.f32.xlu2 %v1581_v22  ;;  %1636 = vmatpush.msra.mxu2 %v1612_v29 }
 0x917   : > { %1637 = vmatpush.msra.mxu2 %v1611_v30 }
 0x988   : > { %v1583_v23 = vpop.xlane.xlu2 %1582 }
 0x989   : > { %v1584_v24 = vmul.f32 %v1583_v23, %v2509_v7 }
 0x98b   : > { %v1585_v25 = vsub.f32 %v2633_v20, %v1584_v24 }
 0x98d   : > { %v1586_v26 = vmul.f32 %v1585_v25, %v1585_v25 }
 0x98f   : > { %v1587_v27 = vsel %vm1021_vm9, %v1586_v26, 0.0 }
 0x990   : > { %1588 = vadd.xlane.f32.xlu0 %v1587_v27 }
 0xa03   : > { %v1589_v34 = vpop.xlane.xlu0 %1588 }
 0xa04   : > { %v1590_v35 = vmul.f32 %v1589_v34, %v2509_v7 }
 0xa06   : > { %v1591_v37 = vadd.f32 1e-12, %v1590_v35 }
 0xa08   : > { %2024 = vrsqrt.f32 %v1591_v37  ;;  %vm1598_vm3 = vweird.f32 %v1591_v37 }
 0xa0e   : > { %v2025_v39 = vpop.eup %2024 }
 0xa0f   : > { %v1593_v40 = vmul.f32 %v2025_v39, %v1591_v37  ;;  %vm1599_vm2 = vweird.f32 %v2025_v39 }
 0xa10   : > { %vm1600_vm4 = vmor %vm1598_vm3, %vm1599_vm2 }
 0xa11   : > { %v1594_v0 = vmul.f32 %v2025_v39, %v1593_v40 }
 0xa13   : > { %v1595_v1 = vmul.f32 0.5, %v1594_v0 }
 0xa15   : > { %v1596_v42 = vsub.f32 1.5, %v1595_v1 }
 0xa17   : > { %v1597_v7 = vmul.f32 %v2025_v39, %v1596_v42 }
 0xa19   : > { %v1601_v44 = vsel %vm1600_vm4, %v2025_v39, %v1597_v7 }
 0xa1a   : > { %v1602_v45 = vmul.f32 %v1601_v44, %v1585_v25 }
 0xa1c   : > { %v1606_v47 = vmul.f32 %v2000_v43, %v1602_v45 }
 0xa1e   : > { %v1610_v48 = vadd.f32 %v2001_v46, %v1606_v47 }
 0xa20   : > { %1898 = vmatmul.msk.f32.vlgmr.msra.gmra.mxu2 %vm1021_vm9, %v1610_v48 }
 0xaa3   : > { %v1639_v52 = vpop.f32.mrf.mxu2 }
 0xaa4   : > { %v1640_v53 = vadd.f32 %v2002_v41, %v1639_v52 }
 0xaa6   : > { %v1642_v54 = vmax.f32 %v1640_v53, 0.0 }
 0xaa8   : > { %1899 = vmatmul.msk.f32.vlgmr.msrb.gmra.mxu0 %vm1655_vm5, %v1642_v54 }
 0xb25   : > { %v1676_v56 = vpop.f32.mrf.mxu0 }
 0xb26   : > { %v1677_v57 = vadd.f32 %v2003_v55, %v1676_v56 }
 0xb28   : > { %v1679_v58 = vadd.f32 %v1677_v57, %v2633_v20 }
 0xb2a   : > { %1680 = vst.msk [vmem:[%s643_s1] sm:$0xff] %vm1021_vm9, %v1679_v58 }
 0xb2b   : > { %2053 = shalt.err (!%p2050_p9)
}
 0xb2c   : > { %1906 = dma.vmem_to_hbm [thread:$0]  (%p2276_p3), %s1697_s25, 128, %s1699_s19, %s1682_s30  }
 0xb2d PF: > { %s2815_s1 = sld [smem:[#allocation13_spill]] }
 0xb2e   : > { %s2816_s18 = sld [smem:[#allocation7_spill]] }
 0xb33   : > { %p1912_p10 = scmp.ge.s32.totalorder %s2815_s1, 2 }
 0xb34   : > { %s1710_s14 = sand.u32 1, %s2816_s18  }
 0xb35   : > { %p1909_p11 = pnand %p1912_p10, %p2285_p8  ;;  %s1711_s20 = scalar_lea.sflag [#allocation5], %s1710_s14 }
 0xb37   : > { %p1910_p12 = pneg %p1909_p11 }
 0xb39   : > { %2087 = dma.done.wait (%p1910_p12), %s1711_s20, 128  }
 0xb3a   : > { %2089 = vsyncadd (%p1910_p12), %s1711_s20, 4294967168  ;;  %s32_s23 = sadd.s32 1, %s2815_s1   ;;  %s2818_s0 = sld [smem:[#allocation8_spill]] }
 0xb3b   : > { %p29_p13 = scmp.ge.s32.totalorder %s32_s23, 6   ;;  %s2819_s30 = sld [smem:[#allocation9_spill]] }
 0xb3c   : > { %s2820_s20 = sld [smem:[#allocation18_spill]] }
 0xb3d   : > { %s2821_s21 = sld [smem:[#allocation11_spill]]  ;;  %31 = sbr.rel (!%p29_p13) target bundleno = 16 (0x10), region = 174 }
 0xb3e   : > { %s2822_s1 = sld [smem:[#allocation12_spill]] }
 0xb3f   : > { %s2823_s22 = sld [smem:[#allocation14_spill]] }
 0xb40   : > { %s2824_s2 = sld [smem:[#allocation16_spill]] }
 0xb42   :  { %1717 = vsyncpa [#allocation5], 1 }
 0xb43   :  { %1719 = vsyncpa [#allocation5 + $0x1], 1 }

</bundles_post_ra>
